<compile_context>
chip_gen: v5e
topology: v5e:2x2
jax: 0.10.0
libtpu: 0.0.40
codegen_flags: <defaults>
</compile_context>

<pallas_src>
import functools

import jax
import jax.numpy as jnp
from jax.experimental import pallas as pl
from jax.experimental.pallas import tpu as pltpu

EPS = 1e-5


def _fold_lanes(row_vec, c):
    """(1, G*c) -> (1, c): sum the G lane-groups (per-channel reduction)."""
    width = row_vec.shape[1]
    # tree-halve while the group count stays even (keeps channel alignment)
    while width > c and (width // c) % 2 == 0:
        half = width // 2
        row_vec = row_vec[:, :half] + row_vec[:, half:]
        width = half
    if width > c:  # linear fallback for odd group counts
        acc = row_vec[:, :c]
        for g in range(1, width // c):
            acc = acc + row_vec[:, g * c:(g + 1) * c]
        row_vec = acc
    return row_vec


def _tile_lanes(row_vec, groups):
    """(1, c) -> (1, groups*c): repeat a per-channel vector across lane groups.

    Single lane-concat — no chain of intermediate doubling rows."""
    if groups == 1:
        return row_vec
    return jnp.concatenate([row_vec] * groups, axis=1)


def bottleneck_kernel(x_ref, w1_ref, g1_ref, b1t_ref,
                      w2a_ref, w2b_ref, w2c_ref, g2_ref, b2t_ref,
                      w3_ref, g3_ref, b3t_ref, out_ref,
                      *, n, h, w, planes, cout):
    mxu_dtype = w1_ref.dtype          # weights arrive pre-cast (bf16 default)
    rows = n * h
    inv_cnt = 1.0 / float(n * h * w)  # BN normalizes over the (N, H, W) axes

    def bn(zd, g_ref, bt_ref, c, relu):
        """Training-mode BatchNorm (+ optional ReLU) on a dense (rows, G*c) slab.

        Two-pass stats (mean, then variance of the centered slab) match the
        reference formula without cancellation; all math in f32. Beta arrives
        pre-tiled to the dense lane layout."""
        groups = zd.shape[1] // c
        mean = _fold_lanes(jnp.sum(zd, axis=0, keepdims=True), c) * inv_cnt
        centered = zd - _tile_lanes(mean, groups)
        var = _fold_lanes(jnp.sum(centered * centered, axis=0, keepdims=True),
                          c) * inv_cnt
        scale = g_ref[...] * jax.lax.rsqrt(var + EPS)        # (1, c), EUP rsqrt
        y = centered * _tile_lanes(scale, groups) + bt_ref[...]
        return jnp.maximum(y, 0.0) if relu else y

    x = x_ref[...]                                           # (rows, W*Cin) f32

    # conv1 (1x1): one block-diagonal MXU dot, then bn1 + relu.
    y1 = jnp.dot(x.astype(mxu_dtype), w1_ref[...],
                 preferred_element_type=jnp.float32)         # (rows, W*P) f32
    y1 = bn(y1, g1_ref, b1t_ref, planes, relu=True)

    # conv2 (3x3, stride=1, pad=1): ky row taps via XLU sublane rolls + image-
    # boundary zero masks (no quadratic shift matmuls); kx taps are folded into
    # each per-ky banded weight; three accumulating dots (no 3x-wide concat).
    row_idx = jax.lax.broadcasted_iota(jnp.int32, (rows, 1), 0)
    up_mask = (row_idx % h != 0).astype(jnp.float32)         # zero-pad top row
    dn_mask = (row_idx % h != h - 1).astype(jnp.float32)     # zero-pad bottom row
    t_up = pltpu.roll(y1, shift=1, axis=0) * up_mask         # t_up[r] = y1[r-1]
    t_dn = pltpu.roll(y1, shift=rows - 1, axis=0) * dn_mask  # t_dn[r] = y1[r+1]

    y2 = jnp.dot(t_up.astype(mxu_dtype), w2a_ref[...],
                 preferred_element_type=jnp.float32)
    y2 = y2 + jnp.dot(y1.astype(mxu_dtype), w2b_ref[...],
                      preferred_element_type=jnp.float32)
    y2 = y2 + jnp.dot(t_dn.astype(mxu_dtype), w2c_ref[...],
                      preferred_element_type=jnp.float32)    # (rows, W*P) f32
    y2 = bn(y2, g2_ref, b2t_ref, planes, relu=True)

    # conv3 (1x1): one dot, bn3 (no relu yet).
    y3 = jnp.dot(y2.astype(mxu_dtype), w3_ref[...],
                 preferred_element_type=jnp.float32)         # (rows, W*Cout)
    y3 = bn(y3, g3_ref, b3t_ref, cout, relu=False)

    # identity residual + final relu; lane-dense, unmasked store.
    out_ref[...] = jnp.maximum(y3 + x, 0.0)


def prepare_bottleneck_params(params, width, mxu_dtype=jnp.bfloat16):
    """One-time per-layer weight prep — hoisted out of the forward pass.

    * 1x1 convs -> block-diagonal kron(I_W, w) dense weights; 3x3 conv -> three
      per-ky banded weights (kx taps folded in).
    * All matmul weights pre-cast to the MXU dtype (bf16 by default: bf16-native
      MXUs on v5e/v6e/v7x, half the weight DMA/VMEM bytes).
    * BN beta pre-tiled to the dense lane layout; gamma stays per-channel (it
      multiplies the dynamic rsqrt(var) before tiling inside the kernel).
    Cache the returned dict per layer; do NOT rebuild it every forward call.
    """
    # TODO(synk): for production channel counts (planes >= 128) skip the kron
    # weights entirely (W-fold FLOP / W^2-fold weight blow-up): run conv1/conv3
    # as plain (N*H*W, C) x (C, P) dots on a channels-last slab and conv2 as 9
    # accumulating dots over rolled+masked slabs; this kron path is only for
    # small-channel blocks where W*C stays within a few hundred lanes.
    w1, g1, b1, w2, g2, b2, w3, g3, b3 = params
    planes = w1.shape[1]
    eye_w = jnp.eye(width, dtype=jnp.float32)
    w1d = jnp.kron(eye_w, w1).astype(mxu_dtype)              # (W*Cin, W*P)
    w3d = jnp.kron(eye_w, w3).astype(mxu_dtype)              # (W*P,  W*Cout)
    w2ky = []
    for ky in range(3):                                      # per-ky banded block
        m = jnp.zeros((width * planes, width * planes), jnp.float32)
        for dx in (-1, 0, 1):
            m = m + jnp.kron(jnp.eye(width, k=-dx, dtype=jnp.float32),
                             w2[ky, dx + 1])
        w2ky.append(m.astype(mxu_dtype))
    return dict(
        w1d=w1d, w2a=w2ky[0], w2b=w2ky[1], w2c=w2ky[2], w3d=w3d,
        g1=g1, b1t=jnp.tile(b1, (1, width)),
        g2=g2, b2t=jnp.tile(b2, (1, width)),
        g3=g3, b3t=jnp.tile(b3, (1, width)),
    )


def bottleneck_forward_dense(x_dense, prep, *, n, h, w, planes):
    """Forward on a lane-dense (N*H, W*C) activation slab.

    This is the production entry point: keep activations in this layout across
    consecutive blocks so no per-call NCHW<->dense transpose round-trip is paid.
    """
    cin = x_dense.shape[1] // w
    cout = prep["g3"].shape[1]
    assert cin == cout == 4 * planes, (
        "identity residual requires inplanes == planes*4 (stride=1, no downsample)")

    kernel = functools.partial(bottleneck_kernel, n=n, h=h, w=w,
                               planes=planes, cout=cout)

    def full(shape):
        return pl.BlockSpec(shape, lambda i, _r=len(shape): (0,) * _r)

    args = (x_dense, prep["w1d"], prep["g1"], prep["b1t"],
            prep["w2a"], prep["w2b"], prep["w2c"], prep["g2"], prep["b2t"],
            prep["w3d"], prep["g3"], prep["b3t"])

    # TODO(synk): for production shapes, tile rows (N / N*H blocks with matmul
    # M >= 256 on v6e/v7x, >= 128 on v5e) over a grid with
    # dimension_semantics=("parallel",) so v7x's two TensorCores both work,
    # double-buffered BlockSpecs sized for its 64 MiB VMEM, and a two-pass BN
    # (per-tile sum/sum-sq partials, then a normalize pass). The single-step
    # whole-batch slab below targets small inputs only.
    return pl.pallas_call(
        kernel,
        out_shape=jax.ShapeDtypeStruct((n * h, w * cout), jnp.float32),
        grid_spec=pltpu.PrefetchScalarGridSpec(
            num_scalar_prefetch=0,
            grid=(1,),
            in_specs=[full(a.shape) for a in args],
            out_specs=full((n * h, w * cout)),
        ),
        compiler_params=pltpu.CompilerParams(
            dimension_semantics=("arbitrary",),
            vmem_limit_bytes=32 * 1024 * 1024),
    )(*args)


def bottleneck_forward_nchw(x_nchw, prep, planes):
    """NCHW convenience wrapper (demo / parity with the PyTorch module).

    In a real network keep the lane-dense layout end-to-end and call
    bottleneck_forward_dense directly instead of paying this transpose
    round-trip per block."""
    n, cin, h, w = x_nchw.shape
    x_dense = jnp.transpose(x_nchw, (0, 2, 3, 1)).reshape(n * h, w * cin)
    out_dense = bottleneck_forward_dense(x_dense, prep, n=n, h=h, w=w,
                                         planes=planes)
    return jnp.transpose(out_dense.reshape(n, h, w, cin), (0, 3, 1, 2))


def reference_forward(x_nchw, params):
    """Pure-JAX reference (matches PyTorch train-mode Bottleneck.forward)."""
    w1, g1, b1, w2, g2, b2, w3, g3, b3 = params
    x = jnp.transpose(x_nchw, (0, 2, 3, 1))

    def conv(z, w, pad):
        return jax.lax.conv_general_dilated(
            z, w, (1, 1), pad,
            dimension_numbers=("NHWC", "HWIO", "NHWC"),
            precision=jax.lax.Precision.HIGHEST)

    def bn(z, g, b):
        mean = jnp.mean(z, axis=(0, 1, 2), keepdims=True)
        var = jnp.mean((z - mean) ** 2, axis=(0, 1, 2), keepdims=True)
        return ((z - mean) * jax.lax.rsqrt(var + EPS)
                * g.reshape(1, 1, 1, -1) + b.reshape(1, 1, 1, -1))

    y = jax.nn.relu(bn(conv(x, w1[None, None], "VALID"), g1, b1))
    y = jax.nn.relu(bn(conv(y, w2, ((1, 1), (1, 1))), g2, b2))
    y = bn(conv(y, w3[None, None], "VALID"), g3, b3)
    y = jax.nn.relu(y + x)
    return jnp.transpose(y, (0, 3, 1, 2))


def make_params(key, inplanes, planes):
    ks = jax.random.split(key, 9)
    expansion = 4
    # kernel-friendly layouts: 1x1 convs as (Cin, Cout), 3x3 conv as HWIO
    w1 = 0.1 * jax.random.normal(ks[0], (inplanes, planes), jnp.float32)
    w2 = 0.1 * jax.random.normal(ks[1], (3, 3, planes, planes), jnp.float32)
    w3 = 0.1 * jax.random.normal(ks[2], (planes, planes * expansion), jnp.float32)
    g1 = 1.0 + 0.1 * jax.random.normal(ks[3], (1, planes), jnp.float32)
    b1 = 0.1 * jax.random.normal(ks[4], (1, planes), jnp.float32)
    g2 = 1.0 + 0.1 * jax.random.normal(ks[5], (1, planes), jnp.float32)
    b2 = 0.1 * jax.random.normal(ks[6], (1, planes), jnp.float32)
    g3 = 1.0 + 0.1 * jax.random.normal(ks[7], (1, planes * expansion), jnp.float32)
    b3 = 0.1 * jax.random.normal(ks[8], (1, planes * expansion), jnp.float32)
    return (w1, g1, b1, w2, g2, b2, w3, g3, b3)


if __name__ == "__main__":
    key = jax.random.PRNGKey(0)
    k_x, k_p = jax.random.split(key)

    N, H, W = 2, 16, 16
    planes = 8
    inplanes = planes * 4   # identity residual: stride=1, downsample=None

    x = jax.random.normal(k_x, (N, inplanes, H, W), jnp.float32)
    params = make_params(k_p, inplanes, planes)

    ref = jax.block_until_ready(reference_forward(x, params))

    # f32-MXU path: strict check of the kernel math against the f32 reference.
    prep_f32 = prepare_bottleneck_params(params, W, mxu_dtype=jnp.float32)
    out_f32 = jax.block_until_ready(bottleneck_forward_nchw(x, prep_f32, planes))
    assert out_f32.shape == (N, inplanes, H, W)
    err_f32 = float(jnp.max(jnp.abs(out_f32 - ref)))
    assert jnp.allclose(out_f32, ref, atol=1e-2, rtol=1e-2), err_f32

    # bf16-MXU path (default / production): full-rate MXU, bf16-level tolerance.
    prep_bf16 = prepare_bottleneck_params(params, W)   # mxu_dtype=bfloat16
    out_bf16 = jax.block_until_ready(bottleneck_forward_nchw(x, prep_bf16, planes))
    err_bf16 = float(jnp.max(jnp.abs(out_bf16 - ref)))
    assert jnp.allclose(out_bf16, ref, atol=5e-2, rtol=5e-2), err_bf16

    print("KERNEL_OK")
</pallas_src>

<mosaic_0001>
module attributes {stable_mosaic.version = 11 : i64} {
  func.func @bottleneck_kernel(%arg0: i32, %arg1: memref<32x512xf32, #tpu.memory_space<vmem>>, %arg2: memref<512x128xf32, #tpu.memory_space<vmem>>, %arg3: memref<1x8xf32, #tpu.memory_space<vmem>>, %arg4: memref<1x128xf32, #tpu.memory_space<vmem>>, %arg5: memref<128x128xf32, #tpu.memory_space<vmem>>, %arg6: memref<128x128xf32, #tpu.memory_space<vmem>>, %arg7: memref<128x128xf32, #tpu.memory_space<vmem>>, %arg8: memref<1x8xf32, #tpu.memory_space<vmem>>, %arg9: memref<1x128xf32, #tpu.memory_space<vmem>>, %arg10: memref<128x512xf32, #tpu.memory_space<vmem>>, %arg11: memref<1x32xf32, #tpu.memory_space<vmem>>, %arg12: memref<1x512xf32, #tpu.memory_space<vmem>>, %arg13: memref<32x512xf32, #tpu.memory_space<vmem>>) attributes {dimension_semantics = [#tpu.dimension_semantics<arbitrary>], iteration_bounds = array<i64: 1>, scalar_prefetch = 0 : i64, scratch_operands = 0 : i64, tpu.core_type = #tpu.core_type<tc>, window_params = [{pipeline_mode = #tpu.pipeline_mode<synchronous>, transform_indices = @transform_0, window_bounds = array<i64: 32, 512>}, {pipeline_mode = #tpu.pipeline_mode<synchronous>, transform_indices = @transform_1, window_bounds = array<i64: 512, 128>}, {pipeline_mode = #tpu.pipeline_mode<synchronous>, transform_indices = @transform_2, window_bounds = array<i64: 1, 8>}, {pipeline_mode = #tpu.pipeline_mode<synchronous>, transform_indices = @transform_3, window_bounds = array<i64: 1, 128>}, {pipeline_mode = #tpu.pipeline_mode<synchronous>, transform_indices = @transform_4, window_bounds = array<i64: 128, 128>}, {pipeline_mode = #tpu.pipeline_mode<synchronous>, transform_indices = @transform_5, window_bounds = array<i64: 128, 128>}, {pipeline_mode = #tpu.pipeline_mode<synchronous>, transform_indices = @transform_6, window_bounds = array<i64: 128, 128>}, {pipeline_mode = #tpu.pipeline_mode<synchronous>, transform_indices = @transform_7, window_bounds = array<i64: 1, 8>}, {pipeline_mode = #tpu.pipeline_mode<synchronous>, transform_indices = @transform_8, window_bounds = array<i64: 1, 128>}, {pipeline_mode = #tpu.pipeline_mode<synchronous>, transform_indices = @transform_9, window_bounds = array<i64: 128, 512>}, {pipeline_mode = #tpu.pipeline_mode<synchronous>, transform_indices = @transform_10, window_bounds = array<i64: 1, 32>}, {pipeline_mode = #tpu.pipeline_mode<synchronous>, transform_indices = @transform_11, window_bounds = array<i64: 1, 512>}, {pipeline_mode = #tpu.pipeline_mode<synchronous>, transform_indices = @transform_12, window_bounds = array<i64: 32, 512>}]} {
    %c0 = arith.constant 0 : index
    %c0_0 = arith.constant 0 : index
    %0 = vector.load %arg1[%c0, %c0_0] : memref<32x512xf32, #tpu.memory_space<vmem>>, vector<32x512xf32>
    %c0_1 = arith.constant 0 : index
    %c0_2 = arith.constant 0 : index
    %1 = vector.load %arg2[%c0_1, %c0_2] : memref<512x128xf32, #tpu.memory_space<vmem>>, vector<512x128xf32>
    %cst = arith.constant dense<0.000000e+00> : vector<32x128xf32>
    %2 = tpu.matmul %0, %1, %cst {dimension_numbers = #tpu.dot_dimension_numbers<[1], [0], [0], [1], [0, 0, 1, 1], [], []>} : vector<32x512xf32>, vector<512x128xf32>, vector<32x128xf32> -> vector<32x128xf32>
    %cst_3 = arith.constant dense<0.000000e+00> : vector<128xf32>
    %3 = vector.multi_reduction <add>, %2, %cst_3 [0] : vector<32x128xf32> to vector<128xf32>
    %4 = vector.shape_cast %3 : vector<128xf32> to vector<1x128xf32>
    %5 = vector.extract_strided_slice %4 {offsets = [0, 0], sizes = [1, 64], strides = [1, 1]} : vector<1x128xf32> to vector<1x64xf32>
    %6 = vector.extract_strided_slice %4 {offsets = [0, 64], sizes = [1, 64], strides = [1, 1]} : vector<1x128xf32> to vector<1x64xf32>
    %7 = arith.addf %5, %6 : vector<1x64xf32>
    %8 = vector.extract_strided_slice %7 {offsets = [0, 0], sizes = [1, 32], strides = [1, 1]} : vector<1x64xf32> to vector<1x32xf32>
    %9 = vector.extract_strided_slice %7 {offsets = [0, 32], sizes = [1, 32], strides = [1, 1]} : vector<1x64xf32> to vector<1x32xf32>
    %10 = arith.addf %8, %9 : vector<1x32xf32>
    %11 = vector.extract_strided_slice %10 {offsets = [0, 0], sizes = [1, 16], strides = [1, 1]} : vector<1x32xf32> to vector<1x16xf32>
    %12 = vector.extract_strided_slice %10 {offsets = [0, 16], sizes = [1, 16], strides = [1, 1]} : vector<1x32xf32> to vector<1x16xf32>
    %13 = arith.addf %11, %12 : vector<1x16xf32>
    %14 = vector.extract_strided_slice %13 {offsets = [0, 0], sizes = [1, 8], strides = [1, 1]} : vector<1x16xf32> to vector<1x8xf32>
    %15 = vector.extract_strided_slice %13 {offsets = [0, 8], sizes = [1, 8], strides = [1, 1]} : vector<1x16xf32> to vector<1x8xf32>
    %16 = arith.addf %14, %15 : vector<1x8xf32>
    %cst_4 = arith.constant 0.001953125 : f32
    %17 = vector.broadcast %cst_4 : f32 to vector<1x8xf32>
    %18 = arith.mulf %16, %17 : vector<1x8xf32>
    %19 = tpu.concatenate %18, %18, %18, %18, %18, %18, %18, %18, %18, %18, %18, %18, %18, %18, %18, %18 in 1 : vector<1x8xf32>, vector<1x8xf32>, vector<1x8xf32>, vector<1x8xf32>, vector<1x8xf32>, vector<1x8xf32>, vector<1x8xf32>, vector<1x8xf32>, vector<1x8xf32>, vector<1x8xf32>, vector<1x8xf32>, vector<1x8xf32>, vector<1x8xf32>, vector<1x8xf32>, vector<1x8xf32>, vector<1x8xf32> -> vector<1x128xf32>
    %20 = vector.broadcast %19 : vector<1x128xf32> to vector<32x128xf32>
    %21 = arith.subf %2, %20 : vector<32x128xf32>
    %22 = arith.mulf %21, %21 : vector<32x128xf32>
    %cst_5 = arith.constant dense<0.000000e+00> : vector<128xf32>
    %23 = vector.multi_reduction <add>, %22, %cst_5 [0] : vector<32x128xf32> to vector<128xf32>
    %24 = vector.shape_cast %23 : vector<128xf32> to vector<1x128xf32>
    %25 = vector.extract_strided_slice %24 {offsets = [0, 0], sizes = [1, 64], strides = [1, 1]} : vector<1x128xf32> to vector<1x64xf32>
    %26 = vector.extract_strided_slice %24 {offsets = [0, 64], sizes = [1, 64], strides = [1, 1]} : vector<1x128xf32> to vector<1x64xf32>
    %27 = arith.addf %25, %26 : vector<1x64xf32>
    %28 = vector.extract_strided_slice %27 {offsets = [0, 0], sizes = [1, 32], strides = [1, 1]} : vector<1x64xf32> to vector<1x32xf32>
    %29 = vector.extract_strided_slice %27 {offsets = [0, 32], sizes = [1, 32], strides = [1, 1]} : vector<1x64xf32> to vector<1x32xf32>
    %30 = arith.addf %28, %29 : vector<1x32xf32>
    %31 = vector.extract_strided_slice %30 {offsets = [0, 0], sizes = [1, 16], strides = [1, 1]} : vector<1x32xf32> to vector<1x16xf32>
    %32 = vector.extract_strided_slice %30 {offsets = [0, 16], sizes = [1, 16], strides = [1, 1]} : vector<1x32xf32> to vector<1x16xf32>
    %33 = arith.addf %31, %32 : vector<1x16xf32>
    %34 = vector.extract_strided_slice %33 {offsets = [0, 0], sizes = [1, 8], strides = [1, 1]} : vector<1x16xf32> to vector<1x8xf32>
    %35 = vector.extract_strided_slice %33 {offsets = [0, 8], sizes = [1, 8], strides = [1, 1]} : vector<1x16xf32> to vector<1x8xf32>
    %36 = arith.addf %34, %35 : vector<1x8xf32>
    %cst_6 = arith.constant 0.001953125 : f32
    %37 = vector.broadcast %cst_6 : f32 to vector<1x8xf32>
    %38 = arith.mulf %36, %37 : vector<1x8xf32>
    %c0_7 = arith.constant 0 : index
    %c0_8 = arith.constant 0 : index
    %39 = vector.load %arg3[%c0_7, %c0_8] : memref<1x8xf32, #tpu.memory_space<vmem>>, vector<1x8xf32>
    %cst_9 = arith.constant 9.99999974E-6 : f32
    %40 = vector.broadcast %cst_9 : f32 to vector<1x8xf32>
    %41 = arith.addf %38, %40 : vector<1x8xf32>
    %42 = math.rsqrt %41 : vector<1x8xf32>
    %43 = arith.mulf %39, %42 : vector<1x8xf32>
    %44 = tpu.concatenate %43, %43, %43, %43, %43, %43, %43, %43, %43, %43, %43, %43, %43, %43, %43, %43 in 1 : vector<1x8xf32>, vector<1x8xf32>, vector<1x8xf32>, vector<1x8xf32>, vector<1x8xf32>, vector<1x8xf32>, vector<1x8xf32>, vector<1x8xf32>, vector<1x8xf32>, vector<1x8xf32>, vector<1x8xf32>, vector<1x8xf32>, vector<1x8xf32>, vector<1x8xf32>, vector<1x8xf32>, vector<1x8xf32> -> vector<1x128xf32>
    %45 = vector.broadcast %44 : vector<1x128xf32> to vector<32x128xf32>
    %46 = arith.mulf %21, %45 : vector<32x128xf32>
    %c0_10 = arith.constant 0 : index
    %c0_11 = arith.constant 0 : index
    %47 = vector.load %arg4[%c0_10, %c0_11] : memref<1x128xf32, #tpu.memory_space<vmem>>, vector<1x128xf32>
    %48 = vector.broadcast %47 : vector<1x128xf32> to vector<32x128xf32>
    %49 = arith.addf %46, %48 : vector<32x128xf32>
    %cst_12 = arith.constant 0.000000e+00 : f32
    %50 = vector.broadcast %cst_12 : f32 to vector<32x128xf32>
    %51 = arith.maximumf %49, %50 : vector<32x128xf32>
    %52 = tpu.iota {dimensions = array<i32: 0>} : vector<32x1xi32>
    %c16_i32 = arith.constant 16 : i32
    %c0_i32 = arith.constant 0 : i32
    %53 = arith.cmpi eq, %c16_i32, %c0_i32 : i32
    %c1_i32 = arith.constant 1 : i32
    %54 = arith.select %53, %c1_i32, %c16_i32 : i32
    %55 = vector.broadcast %54 : i32 to vector<32x1xi32>
    %56 = arith.remsi %52, %55 : vector<32x1xi32>
    %c0_i32_13 = arith.constant 0 : i32
    %57 = vector.broadcast %c0_i32_13 : i32 to vector<32x1xi32>
    %58 = arith.cmpi ne, %56, %57 : vector<32x1xi32>
    %c0_i32_14 = arith.constant 0 : i32
    %59 = vector.broadcast %c0_i32_14 : i32 to vector<32x1xi32>
    %60 = arith.cmpi slt, %56, %59 : vector<32x1xi32>
    %c0_i32_15 = arith.constant 0 : i32
    %61 = arith.cmpi slt, %54, %c0_i32_15 : i32
    %62 = vector.broadcast %61 : i1 to vector<32x1xi1>
    %63 = vector.broadcast %62 : vector<32x1xi1> to vector<32x1xi1>
    %64 = arith.xori %60, %63 : vector<32x1xi1>
    %65 = arith.andi %64, %58 : vector<32x1xi1>
    %66 = vector.broadcast %54 : i32 to vector<32x1xi32>
    %67 = arith.addi %56, %66 : vector<32x1xi32>
    %68 = arith.select %65, %67, %56 : vector<32x1xi1>, vector<32x1xi32>
    %c0_i32_16 = arith.constant 0 : i32
    %69 = vector.broadcast %c0_i32_16 : i32 to vector<32x1xi32>
    %70 = arith.cmpi ne, %68, %69 : vector<32x1xi32>
    %71 = arith.extui %70 : vector<32x1xi1> to vector<32x1xi32>
    %72 = arith.sitofp %71 : vector<32x1xi32> to vector<32x1xf32>
    %c16_i32_17 = arith.constant 16 : i32
    %c0_i32_18 = arith.constant 0 : i32
    %73 = arith.cmpi eq, %c16_i32_17, %c0_i32_18 : i32
    %c1_i32_19 = arith.constant 1 : i32
    %74 = arith.select %73, %c1_i32_19, %c16_i32_17 : i32
    %75 = vector.broadcast %74 : i32 to vector<32x1xi32>
    %76 = arith.remsi %52, %75 : vector<32x1xi32>
    %c0_i32_20 = arith.constant 0 : i32
    %77 = vector.broadcast %c0_i32_20 : i32 to vector<32x1xi32>
    %78 = arith.cmpi ne, %76, %77 : vector<32x1xi32>
    %c0_i32_21 = arith.constant 0 : i32
    %79 = vector.broadcast %c0_i32_21 : i32 to vector<32x1xi32>
    %80 = arith.cmpi slt, %76, %79 : vector<32x1xi32>
    %c0_i32_22 = arith.constant 0 : i32
    %81 = arith.cmpi slt, %74, %c0_i32_22 : i32
    %82 = vector.broadcast %81 : i1 to vector<32x1xi1>
    %83 = vector.broadcast %82 : vector<32x1xi1> to vector<32x1xi1>
    %84 = arith.xori %80, %83 : vector<32x1xi1>
    %85 = arith.andi %84, %78 : vector<32x1xi1>
    %86 = vector.broadcast %74 : i32 to vector<32x1xi32>
    %87 = arith.addi %76, %86 : vector<32x1xi32>
    %88 = arith.select %85, %87, %76 : vector<32x1xi1>, vector<32x1xi32>
    %c15_i32 = arith.constant 15 : i32
    %89 = vector.broadcast %c15_i32 : i32 to vector<32x1xi32>
    %90 = arith.cmpi ne, %88, %89 : vector<32x1xi32>
    %91 = arith.extui %90 : vector<32x1xi1> to vector<32x1xi32>
    %92 = arith.sitofp %91 : vector<32x1xi32> to vector<32x1xf32>
    %c1_i32_23 = arith.constant 1 : i32
    %93 = tpu.dynamic_rotate %51 by %c1_i32_23 dim 0 : vector<32x128xf32>, i32 -> vector<32x128xf32>
    %94 = vector.broadcast %72 : vector<32x1xf32> to vector<32x128xf32>
    %95 = arith.mulf %93, %94 : vector<32x128xf32>
    %c31_i32 = arith.constant 31 : i32
    %96 = tpu.dynamic_rotate %51 by %c31_i32 dim 0 : vector<32x128xf32>, i32 -> vector<32x128xf32>
    %97 = vector.broadcast %92 : vector<32x1xf32> to vector<32x128xf32>
    %98 = arith.mulf %96, %97 : vector<32x128xf32>
    %c0_24 = arith.constant 0 : index
    %c0_25 = arith.constant 0 : index
    %99 = vector.load %arg5[%c0_24, %c0_25] : memref<128x128xf32, #tpu.memory_space<vmem>>, vector<128x128xf32>
    %cst_26 = arith.constant dense<0.000000e+00> : vector<32x128xf32>
    %100 = tpu.matmul %95, %99, %cst_26 {dimension_numbers = #tpu.dot_dimension_numbers<[1], [0], [0], [1], [0, 0, 1, 1], [], []>} : vector<32x128xf32>, vector<128x128xf32>, vector<32x128xf32> -> vector<32x128xf32>
    %c0_27 = arith.constant 0 : index
    %c0_28 = arith.constant 0 : index
    %101 = vector.load %arg6[%c0_27, %c0_28] : memref<128x128xf32, #tpu.memory_space<vmem>>, vector<128x128xf32>
    %cst_29 = arith.constant dense<0.000000e+00> : vector<32x128xf32>
    %102 = tpu.matmul %51, %101, %cst_29 {dimension_numbers = #tpu.dot_dimension_numbers<[1], [0], [0], [1], [0, 0, 1, 1], [], []>} : vector<32x128xf32>, vector<128x128xf32>, vector<32x128xf32> -> vector<32x128xf32>
    %103 = arith.addf %100, %102 : vector<32x128xf32>
    %c0_30 = arith.constant 0 : index
    %c0_31 = arith.constant 0 : index
    %104 = vector.load %arg7[%c0_30, %c0_31] : memref<128x128xf32, #tpu.memory_space<vmem>>, vector<128x128xf32>
    %cst_32 = arith.constant dense<0.000000e+00> : vector<32x128xf32>
    %105 = tpu.matmul %98, %104, %cst_32 {dimension_numbers = #tpu.dot_dimension_numbers<[1], [0], [0], [1], [0, 0, 1, 1], [], []>} : vector<32x128xf32>, vector<128x128xf32>, vector<32x128xf32> -> vector<32x128xf32>
    %106 = arith.addf %103, %105 : vector<32x128xf32>
    %cst_33 = arith.constant dense<0.000000e+00> : vector<128xf32>
    %107 = vector.multi_reduction <add>, %106, %cst_33 [0] : vector<32x128xf32> to vector<128xf32>
    %108 = vector.shape_cast %107 : vector<128xf32> to vector<1x128xf32>
    %109 = vector.extract_strided_slice %108 {offsets = [0, 0], sizes = [1, 64], strides = [1, 1]} : vector<1x128xf32> to vector<1x64xf32>
    %110 = vector.extract_strided_slice %108 {offsets = [0, 64], sizes = [1, 64], strides = [1, 1]} : vector<1x128xf32> to vector<1x64xf32>
    %111 = arith.addf %109, %110 : vector<1x64xf32>
    %112 = vector.extract_strided_slice %111 {offsets = [0, 0], sizes = [1, 32], strides = [1, 1]} : vector<1x64xf32> to vector<1x32xf32>
    %113 = vector.extract_strided_slice %111 {offsets = [0, 32], sizes = [1, 32], strides = [1, 1]} : vector<1x64xf32> to vector<1x32xf32>
    %114 = arith.addf %112, %113 : vector<1x32xf32>
    %115 = vector.extract_strided_slice %114 {offsets = [0, 0], sizes = [1, 16], strides = [1, 1]} : vector<1x32xf32> to vector<1x16xf32>
    %116 = vector.extract_strided_slice %114 {offsets = [0, 16], sizes = [1, 16], strides = [1, 1]} : vector<1x32xf32> to vector<1x16xf32>
    %117 = arith.addf %115, %116 : vector<1x16xf32>
    %118 = vector.extract_strided_slice %117 {offsets = [0, 0], sizes = [1, 8], strides = [1, 1]} : vector<1x16xf32> to vector<1x8xf32>
    %119 = vector.extract_strided_slice %117 {offsets = [0, 8], sizes = [1, 8], strides = [1, 1]} : vector<1x16xf32> to vector<1x8xf32>
    %120 = arith.addf %118, %119 : vector<1x8xf32>
    %cst_34 = arith.constant 0.001953125 : f32
    %121 = vector.broadcast %cst_34 : f32 to vector<1x8xf32>
    %122 = arith.mulf %120, %121 : vector<1x8xf32>
    %123 = tpu.concatenate %122, %122, %122, %122, %122, %122, %122, %122, %122, %122, %122, %122, %122, %122, %122, %122 in 1 : vector<1x8xf32>, vector<1x8xf32>, vector<1x8xf32>, vector<1x8xf32>, vector<1x8xf32>, vector<1x8xf32>, vector<1x8xf32>, vector<1x8xf32>, vector<1x8xf32>, vector<1x8xf32>, vector<1x8xf32>, vector<1x8xf32>, vector<1x8xf32>, vector<1x8xf32>, vector<1x8xf32>, vector<1x8xf32> -> vector<1x128xf32>
    %124 = vector.broadcast %123 : vector<1x128xf32> to vector<32x128xf32>
    %125 = arith.subf %106, %124 : vector<32x128xf32>
    %126 = arith.mulf %125, %125 : vector<32x128xf32>
    %cst_35 = arith.constant dense<0.000000e+00> : vector<128xf32>
    %127 = vector.multi_reduction <add>, %126, %cst_35 [0] : vector<32x128xf32> to vector<128xf32>
    %128 = vector.shape_cast %127 : vector<128xf32> to vector<1x128xf32>
    %129 = vector.extract_strided_slice %128 {offsets = [0, 0], sizes = [1, 64], strides = [1, 1]} : vector<1x128xf32> to vector<1x64xf32>
    %130 = vector.extract_strided_slice %128 {offsets = [0, 64], sizes = [1, 64], strides = [1, 1]} : vector<1x128xf32> to vector<1x64xf32>
    %131 = arith.addf %129, %130 : vector<1x64xf32>
    %132 = vector.extract_strided_slice %131 {offsets = [0, 0], sizes = [1, 32], strides = [1, 1]} : vector<1x64xf32> to vector<1x32xf32>
    %133 = vector.extract_strided_slice %131 {offsets = [0, 32], sizes = [1, 32], strides = [1, 1]} : vector<1x64xf32> to vector<1x32xf32>
    %134 = arith.addf %132, %133 : vector<1x32xf32>
    %135 = vector.extract_strided_slice %134 {offsets = [0, 0], sizes = [1, 16], strides = [1, 1]} : vector<1x32xf32> to vector<1x16xf32>
    %136 = vector.extract_strided_slice %134 {offsets = [0, 16], sizes = [1, 16], strides = [1, 1]} : vector<1x32xf32> to vector<1x16xf32>
    %137 = arith.addf %135, %136 : vector<1x16xf32>
    %138 = vector.extract_strided_slice %137 {offsets = [0, 0], sizes = [1, 8], strides = [1, 1]} : vector<1x16xf32> to vector<1x8xf32>
    %139 = vector.extract_strided_slice %137 {offsets = [0, 8], sizes = [1, 8], strides = [1, 1]} : vector<1x16xf32> to vector<1x8xf32>
    %140 = arith.addf %138, %139 : vector<1x8xf32>
    %cst_36 = arith.constant 0.001953125 : f32
    %141 = vector.broadcast %cst_36 : f32 to vector<1x8xf32>
    %142 = arith.mulf %140, %141 : vector<1x8xf32>
    %c0_37 = arith.constant 0 : index
    %c0_38 = arith.constant 0 : index
    %143 = vector.load %arg8[%c0_37, %c0_38] : memref<1x8xf32, #tpu.memory_space<vmem>>, vector<1x8xf32>
    %cst_39 = arith.constant 9.99999974E-6 : f32
    %144 = vector.broadcast %cst_39 : f32 to vector<1x8xf32>
    %145 = arith.addf %142, %144 : vector<1x8xf32>
    %146 = math.rsqrt %145 : vector<1x8xf32>
    %147 = arith.mulf %143, %146 : vector<1x8xf32>
    %148 = tpu.concatenate %147, %147, %147, %147, %147, %147, %147, %147, %147, %147, %147, %147, %147, %147, %147, %147 in 1 : vector<1x8xf32>, vector<1x8xf32>, vector<1x8xf32>, vector<1x8xf32>, vector<1x8xf32>, vector<1x8xf32>, vector<1x8xf32>, vector<1x8xf32>, vector<1x8xf32>, vector<1x8xf32>, vector<1x8xf32>, vector<1x8xf32>, vector<1x8xf32>, vector<1x8xf32>, vector<1x8xf32>, vector<1x8xf32> -> vector<1x128xf32>
    %149 = vector.broadcast %148 : vector<1x128xf32> to vector<32x128xf32>
    %150 = arith.mulf %125, %149 : vector<32x128xf32>
    %c0_40 = arith.constant 0 : index
    %c0_41 = arith.constant 0 : index
    %151 = vector.load %arg9[%c0_40, %c0_41] : memref<1x128xf32, #tpu.memory_space<vmem>>, vector<1x128xf32>
    %152 = vector.broadcast %151 : vector<1x128xf32> to vector<32x128xf32>
    %153 = arith.addf %150, %152 : vector<32x128xf32>
    %cst_42 = arith.constant 0.000000e+00 : f32
    %154 = vector.broadcast %cst_42 : f32 to vector<32x128xf32>
    %155 = arith.maximumf %153, %154 : vector<32x128xf32>
    %c0_43 = arith.constant 0 : index
    %c0_44 = arith.constant 0 : index
    %156 = vector.load %arg10[%c0_43, %c0_44] : memref<128x512xf32, #tpu.memory_space<vmem>>, vector<128x512xf32>
    %cst_45 = arith.constant dense<0.000000e+00> : vector<32x512xf32>
    %157 = tpu.matmul %155, %156, %cst_45 {dimension_numbers = #tpu.dot_dimension_numbers<[1], [0], [0], [1], [0, 0, 1, 1], [], []>} : vector<32x128xf32>, vector<128x512xf32>, vector<32x512xf32> -> vector<32x512xf32>
    %cst_46 = arith.constant dense<0.000000e+00> : vector<512xf32>
    %158 = vector.multi_reduction <add>, %157, %cst_46 [0] : vector<32x512xf32> to vector<512xf32>
    %159 = vector.shape_cast %158 : vector<512xf32> to vector<1x512xf32>
    %160 = vector.extract_strided_slice %159 {offsets = [0, 0], sizes = [1, 256], strides = [1, 1]} : vector<1x512xf32> to vector<1x256xf32>
    %161 = vector.extract_strided_slice %159 {offsets = [0, 256], sizes = [1, 256], strides = [1, 1]} : vector<1x512xf32> to vector<1x256xf32>
    %162 = arith.addf %160, %161 : vector<1x256xf32>
    %163 = vector.extract_strided_slice %162 {offsets = [0, 0], sizes = [1, 128], strides = [1, 1]} : vector<1x256xf32> to vector<1x128xf32>
    %164 = vector.extract_strided_slice %162 {offsets = [0, 128], sizes = [1, 128], strides = [1, 1]} : vector<1x256xf32> to vector<1x128xf32>
    %165 = arith.addf %163, %164 : vector<1x128xf32>
    %166 = vector.extract_strided_slice %165 {offsets = [0, 0], sizes = [1, 64], strides = [1, 1]} : vector<1x128xf32> to vector<1x64xf32>
    %167 = vector.extract_strided_slice %165 {offsets = [0, 64], sizes = [1, 64], strides = [1, 1]} : vector<1x128xf32> to vector<1x64xf32>
    %168 = arith.addf %166, %167 : vector<1x64xf32>
    %169 = vector.extract_strided_slice %168 {offsets = [0, 0], sizes = [1, 32], strides = [1, 1]} : vector<1x64xf32> to vector<1x32xf32>
    %170 = vector.extract_strided_slice %168 {offsets = [0, 32], sizes = [1, 32], strides = [1, 1]} : vector<1x64xf32> to vector<1x32xf32>
    %171 = arith.addf %169, %170 : vector<1x32xf32>
    %cst_47 = arith.constant 0.001953125 : f32
    %172 = vector.broadcast %cst_47 : f32 to vector<1x32xf32>
    %173 = arith.mulf %171, %172 : vector<1x32xf32>
    %174 = tpu.concatenate %173, %173, %173, %173, %173, %173, %173, %173, %173, %173, %173, %173, %173, %173, %173, %173 in 1 : vector<1x32xf32>, vector<1x32xf32>, vector<1x32xf32>, vector<1x32xf32>, vector<1x32xf32>, vector<1x32xf32>, vector<1x32xf32>, vector<1x32xf32>, vector<1x32xf32>, vector<1x32xf32>, vector<1x32xf32>, vector<1x32xf32>, vector<1x32xf32>, vector<1x32xf32>, vector<1x32xf32>, vector<1x32xf32> -> vector<1x512xf32>
    %175 = vector.broadcast %174 : vector<1x512xf32> to vector<32x512xf32>
    %176 = arith.subf %157, %175 : vector<32x512xf32>
    %177 = arith.mulf %176, %176 : vector<32x512xf32>
    %cst_48 = arith.constant dense<0.000000e+00> : vector<512xf32>
    %178 = vector.multi_reduction <add>, %177, %cst_48 [0] : vector<32x512xf32> to vector<512xf32>
    %179 = vector.shape_cast %178 : vector<512xf32> to vector<1x512xf32>
    %180 = vector.extract_strided_slice %179 {offsets = [0, 0], sizes = [1, 256], strides = [1, 1]} : vector<1x512xf32> to vector<1x256xf32>
    %181 = vector.extract_strided_slice %179 {offsets = [0, 256], sizes = [1, 256], strides = [1, 1]} : vector<1x512xf32> to vector<1x256xf32>
    %182 = arith.addf %180, %181 : vector<1x256xf32>
    %183 = vector.extract_strided_slice %182 {offsets = [0, 0], sizes = [1, 128], strides = [1, 1]} : vector<1x256xf32> to vector<1x128xf32>
    %184 = vector.extract_strided_slice %182 {offsets = [0, 128], sizes = [1, 128], strides = [1, 1]} : vector<1x256xf32> to vector<1x128xf32>
    %185 = arith.addf %183, %184 : vector<1x128xf32>
    %186 = vector.extract_strided_slice %185 {offsets = [0, 0], sizes = [1, 64], strides = [1, 1]} : vector<1x128xf32> to vector<1x64xf32>
    %187 = vector.extract_strided_slice %185 {offsets = [0, 64], sizes = [1, 64], strides = [1, 1]} : vector<1x128xf32> to vector<1x64xf32>
    %188 = arith.addf %186, %187 : vector<1x64xf32>
    %189 = vector.extract_strided_slice %188 {offsets = [0, 0], sizes = [1, 32], strides = [1, 1]} : vector<1x64xf32> to vector<1x32xf32>
    %190 = vector.extract_strided_slice %188 {offsets = [0, 32], sizes = [1, 32], strides = [1, 1]} : vector<1x64xf32> to vector<1x32xf32>
    %191 = arith.addf %189, %190 : vector<1x32xf32>
    %cst_49 = arith.constant 0.001953125 : f32
    %192 = vector.broadcast %cst_49 : f32 to vector<1x32xf32>
    %193 = arith.mulf %191, %192 : vector<1x32xf32>
    %c0_50 = arith.constant 0 : index
    %c0_51 = arith.constant 0 : index
    %194 = vector.load %arg11[%c0_50, %c0_51] : memref<1x32xf32, #tpu.memory_space<vmem>>, vector<1x32xf32>
    %cst_52 = arith.constant 9.99999974E-6 : f32
    %195 = vector.broadcast %cst_52 : f32 to vector<1x32xf32>
    %196 = arith.addf %193, %195 : vector<1x32xf32>
    %197 = math.rsqrt %196 : vector<1x32xf32>
    %198 = arith.mulf %194, %197 : vector<1x32xf32>
    %199 = tpu.concatenate %198, %198, %198, %198, %198, %198, %198, %198, %198, %198, %198, %198, %198, %198, %198, %198 in 1 : vector<1x32xf32>, vector<1x32xf32>, vector<1x32xf32>, vector<1x32xf32>, vector<1x32xf32>, vector<1x32xf32>, vector<1x32xf32>, vector<1x32xf32>, vector<1x32xf32>, vector<1x32xf32>, vector<1x32xf32>, vector<1x32xf32>, vector<1x32xf32>, vector<1x32xf32>, vector<1x32xf32>, vector<1x32xf32> -> vector<1x512xf32>
    %200 = vector.broadcast %199 : vector<1x512xf32> to vector<32x512xf32>
    %201 = arith.mulf %176, %200 : vector<32x512xf32>
    %c0_53 = arith.constant 0 : index
    %c0_54 = arith.constant 0 : index
    %202 = vector.load %arg12[%c0_53, %c0_54] : memref<1x512xf32, #tpu.memory_space<vmem>>, vector<1x512xf32>
    %203 = vector.broadcast %202 : vector<1x512xf32> to vector<32x512xf32>
    %204 = arith.addf %201, %203 : vector<32x512xf32>
    %205 = arith.addf %204, %0 : vector<32x512xf32>
    %cst_55 = arith.constant 0.000000e+00 : f32
    %206 = vector.broadcast %cst_55 : f32 to vector<32x512xf32>
    %207 = arith.maximumf %205, %206 : vector<32x512xf32>
    %c0_56 = arith.constant 0 : index
    %c0_57 = arith.constant 0 : index
    %208 = vector.load %arg13[%c0_56, %c0_57] : memref<32x512xf32, #tpu.memory_space<vmem>>, vector<32x512xf32>
    tpu.vector_store %arg13[%c0_56, %c0_57], %207 {strides = array<i32>} : memref<32x512xf32, #tpu.memory_space<vmem>>, vector<32x512xf32>,
    return
  }
  func.func @transform_0(%arg0: i32) -> (i32, i32) {
    %c0_i32 = arith.constant 0 : i32
    %c0_i32_0 = arith.constant 0 : i32
    %c0_i32_1 = arith.constant 0 : i32
    return %c0_i32, %c0_i32_0 : i32, i32
  }
  func.func @transform_1(%arg0: i32) -> (i32, i32) {
    %c0_i32 = arith.constant 0 : i32
    %c0_i32_0 = arith.constant 0 : i32
    %c0_i32_1 = arith.constant 0 : i32
    return %c0_i32, %c0_i32_0 : i32, i32
  }
  func.func @transform_2(%arg0: i32) -> (i32, i32) {
    %c0_i32 = arith.constant 0 : i32
    %c0_i32_0 = arith.constant 0 : i32
    %c0_i32_1 = arith.constant 0 : i32
    return %c0_i32, %c0_i32_0 : i32, i32
  }
  func.func @transform_3(%arg0: i32) -> (i32, i32) {
    %c0_i32 = arith.constant 0 : i32
    %c0_i32_0 = arith.constant 0 : i32
    %c0_i32_1 = arith.constant 0 : i32
    return %c0_i32, %c0_i32_0 : i32, i32
  }
  func.func @transform_4(%arg0: i32) -> (i32, i32) {
    %c0_i32 = arith.constant 0 : i32
    %c0_i32_0 = arith.constant 0 : i32
    %c0_i32_1 = arith.constant 0 : i32
    return %c0_i32, %c0_i32_0 : i32, i32
  }
  func.func @transform_5(%arg0: i32) -> (i32, i32) {
    %c0_i32 = arith.constant 0 : i32
    %c0_i32_0 = arith.constant 0 : i32
    %c0_i32_1 = arith.constant 0 : i32
    return %c0_i32, %c0_i32_0 : i32, i32
  }
  func.func @transform_6(%arg0: i32) -> (i32, i32) {
    %c0_i32 = arith.constant 0 : i32
    %c0_i32_0 = arith.constant 0 : i32
    %c0_i32_1 = arith.constant 0 : i32
    return %c0_i32, %c0_i32_0 : i32, i32
  }
  func.func @transform_7(%arg0: i32) -> (i32, i32) {
    %c0_i32 = arith.constant 0 : i32
    %c0_i32_0 = arith.constant 0 : i32
    %c0_i32_1 = arith.constant 0 : i32
    return %c0_i32, %c0_i32_0 : i32, i32
  }
  func.func @transform_8(%arg0: i32) -> (i32, i32) {
    %c0_i32 = arith.constant 0 : i32
    %c0_i32_0 = arith.constant 0 : i32
    %c0_i32_1 = arith.constant 0 : i32
    return %c0_i32, %c0_i32_0 : i32, i32
  }
  func.func @transform_9(%arg0: i32) -> (i32, i32) {
    %c0_i32 = arith.constant 0 : i32
    %c0_i32_0 = arith.constant 0 : i32
    %c0_i32_1 = arith.constant 0 : i32
    return %c0_i32, %c0_i32_0 : i32, i32
  }
  func.func @transform_10(%arg0: i32) -> (i32, i32) {
    %c0_i32 = arith.constant 0 : i32
    %c0_i32_0 = arith.constant 0 : i32
    %c0_i32_1 = arith.constant 0 : i32
    return %c0_i32, %c0_i32_0 : i32, i32
  }
  func.func @transform_11(%arg0: i32) -> (i32, i32) {
    %c0_i32 = arith.constant 0 : i32
    %c0_i32_0 = arith.constant 0 : i32
    %c0_i32_1 = arith.constant 0 : i32
    return %c0_i32, %c0_i32_0 : i32, i32
  }
  func.func @transform_12(%arg0: i32) -> (i32, i32) {
    %c0_i32 = arith.constant 0 : i32
    %c0_i32_0 = arith.constant 0 : i32
    %c0_i32_1 = arith.constant 0 : i32
    return %c0_i32, %c0_i32_0 : i32, i32
  }
}

</mosaic_0001>

<bundles_post_ra>
// kernel: tpu_custom_call.1
= control target key start
LH: loop header
LB: loop body
LE: loop exit
PB: predicated region body
PF: predicated region fallthrough
CT: control target
= control target key end

     0   :  { %17 = vsyncpa [#allocation3], 0  ;;  %s2382_s0 = inlined_call_operand.hbm [shape: f32[32,512], index: 0, kind: input, shape index: {}]   ;;  %s2383_s1 = inlined_call_operand.hbm [shape: f32[512,128], index: 1, kind: input, shape index: {}]   ;;  %s2384_s2 = inlined_call_operand.vmem [shape: f32[1,8], index: 2, kind: input, shape index: {}]   ;;  %s2385_s3 = inlined_call_operand.vmem [shape: f32[1,128], index: 3, kind: input, shape index: {}]   ;;  %s2386_s4 = inlined_call_operand.hbm [shape: f32[128,128], index: 4, kind: input, shape index: {}]   ;;  %s2387_s5 = inlined_call_operand.hbm [shape: f32[128,128], index: 5, kind: input, shape index: {}]   ;;  %s2388_s6 = inlined_call_operand.hbm [shape: f32[128,128], index: 6, kind: input, shape index: {}]   ;;  %s2389_s7 = inlined_call_operand.vmem [shape: f32[1,8], index: 7, kind: input, shape index: {}]   ;;  %s2390_s8 = inlined_call_operand.hbm [shape: f32[1,128], index: 8, kind: input, shape index: {}]   ;;  %s2391_s9 = inlined_call_operand.hbm [shape: f32[128,512], index: 9, kind: input, shape index: {}]   ;;  %s2392_s10 = inlined_call_operand.vmem [shape: f32[1,32], index: 10, kind: input, shape index: {}]   ;;  %s2393_s11 = inlined_call_operand.vmem [shape: f32[1,512], index: 11, kind: input, shape index: {}]   ;;  %s2394_s12 = inlined_call_operand.hbm [shape: f32[32,512], index: 12, kind: output, shape index: {}]  }
   0x1   :  { %18 = vsyncpa [#allocation6], 0 }
   0x2   :  { %19 = vsyncpa [#allocation9], 0 }
   0x3   :  { %20 = vsyncpa [#allocation12], 0  ;;  %s39_s23 = sshll.u32 %s2383_s1, 4  ;;  %s40_s23 = int_to_ptr.hbm [resolvable:$true] %s39_s23 }
   0x4   :  { %21 = vsyncpa [#allocation4], 0  ;;  %s1784_s24 = smov [#allocation5]   ;;  %s69_s28 = sshll.u32 %s2387_s5, 4  ;;  %s70_s28 = int_to_ptr.hbm [resolvable:$true] %s69_s28 }
   0x5   :  { %s41_s25 = sshll.u32 %s1784_s24, 4  ;;  %s1785_s29 = smov 128   ;;  %s42_s25 = int_to_ptr.vmem [resolvable:$true] %s41_s25 }
   0x6   :  { %s1786_s30 = smov 8   ;;  %s1787_s13 = smov [#allocation8]  }
   0x7   :  { %47 = dma.hbm_to_vmem [thread:$0]  %s40_s23, 8192, %s42_s25, [#allocation6], %s1785_s29, %s1785_s29, %s1786_s30  }
   0x8   :  { %s71_s14 = sshll.u32 %s1787_s13, 4  ;;  %s98_s16 = sshll.u32 %s2390_s8, 4  ;;  %s72_s14 = int_to_ptr.vmem [resolvable:$true] %s71_s14  ;;  %s99_s16 = int_to_ptr.hbm [resolvable:$true] %s98_s16 }
   0x9   :  { %77 = dma.hbm_to_vmem [thread:$0]  %s70_s28, 2048, %s72_s14, [#allocation9], %s1785_s29, %s1785_s29, %s1786_s30  }
   0xa   :  { %s26_s18 = sshll.u32 %s2382_s0, 4  ;;  %s1788_s19 = smov [#allocation11]   ;;  %s27_s18 = int_to_ptr.hbm [resolvable:$true] %s26_s18 }
   0xb   :  { %s100_s20 = sshll.u32 %s1788_s19, 4  ;;  %s1789_s21 = smov [#allocation2]   ;;  %s101_s20 = int_to_ptr.vmem [resolvable:$true] %s100_s20 }
   0xc   :  { %103 = dma.hbm_to_vmem [thread:$0]  %s99_s16, 16, %s101_s20, [#allocation12]  }
   0xd   :  { %s28_s22 = sshll.u32 %s1789_s21, 4  ;;  %s1790_s23 = smov 512   ;;  %s29_s22 = int_to_ptr.vmem [resolvable:$true] %s28_s22 }
   0xe   :  { %s1791_s8 = smov 32   ;;  %s56_s26 = sshll.u32 %s2386_s4, 4  ;;  %s57_s26 = int_to_ptr.hbm [resolvable:$true] %s56_s26 }
   0xf   :  { %34 = dma.hbm_to_vmem [thread:$0]  %s27_s18, 2048, %s29_s22, [#allocation3], %s1790_s23, %s1790_s23, %s1791_s8  }
  0x10   :  { %s1792_s0 = smov [#allocation7]   ;;  %s82_s14 = sshll.u32 %s2388_s6, 4  ;;  %s83_s14 = int_to_ptr.hbm [resolvable:$true] %s82_s14 }
  0x11   :  { %s58_s27 = sshll.u32 %s1792_s0, 4  ;;  %s1793_s15 = smov [#allocation10]   ;;  %s59_s27 = int_to_ptr.vmem [resolvable:$true] %s58_s27 }
  0x12   :  { %64 = dma.hbm_to_vmem [thread:$0]  %s57_s26, 2048, %s59_s27, [#allocation6], %s1785_s29, %s1785_s29, %s1786_s30  }
  0x13   :  { %s84_s1 = sshll.u32 %s1793_s15, 4  ;;  %s108_s17 = sshll.u32 %s2391_s9, 4  ;;  %s85_s1 = int_to_ptr.vmem [resolvable:$true] %s84_s1  ;;  %s109_s17 = int_to_ptr.hbm [resolvable:$true] %s108_s17 }
  0x14   :  { %90 = dma.hbm_to_vmem [thread:$0]  %s83_s14, 2048, %s85_s1, [#allocation9], %s1785_s29, %s1785_s29, %s1786_s30  }
  0x15   :  { %s1794_s4 = smov [#allocation13]  }
  0x16   :  { %s110_s18 = sshll.u32 %s1794_s4, 4  ;;  %s111_s18 = int_to_ptr.vmem [resolvable:$true] %s110_s18 }
  0x17   :  { %116 = dma.hbm_to_vmem [thread:$0]  %s109_s17, 8192, %s111_s18, [#allocation12], %s1790_s23, %s1790_s23, %s1791_s8  }
  0x18   :  { %1774 = dma.done.wait [#allocation3], 2048  }
  0x19   :  { %1775 = vsyncadd [#allocation3], 4294965248 }
  0x1a   :  { %1776 = dma.done.wait [#allocation6], 10240  }
  0x1b   :  { %1777 = vsyncadd [#allocation6], 4294957056 }
  0x1c   :  { %1778 = dma.done.wait [#allocation9], 4096  }
  0x1d   :  { %1779 = vsyncadd [#allocation9], 4294963200 }
  0x1e   :  { %1780 = dma.done.wait [#allocation12], 8208  }
  0x1f   :  { %1781 = vsyncadd [#allocation12], 4294959088  ;;  %v212_v0 = vld [vmem:[#allocation5 + $0x178] sm:$0xff]  ;;  %v211_v1 = vld [vmem:[#allocation5 + $0x170] sm:$0xff]  ;;  %s1795_s6 = smov 64   ;;  %s1796_s9 = smov 96  }
  0x20   :  { %v228_v2 = vld [vmem:[#allocation5 + $0x1f8] sm:$0xff]  ;;  %287 = vmatpush.msra.mxu2 %v212_v0  ;;  %v210_v5 = vld [vmem:[#allocation5 + $0x168] sm:$0xff]  ;;  %v227_v6 = vld [vmem:[#allocation5 + $0x1f0] sm:$0xff]  ;;  %s1797_s29 = smov 112   ;;  %s1798_s19 = smov 120   ;;  %vm421_vm0 = vcmask 64512  }
  0x21   :  { %316 = vmatpush.msra.mxu3 %v228_v2  ;;  %v180_v3 = vld [vmem:[#allocation5 + $0x78] sm:$0xff]  ;;  %v179_v7 = vld [vmem:[#allocation5 + $0x70] sm:$0xff]  ;;  %v226_v9 = vld [vmem:[#allocation5 + $0x1e8] sm:$0xff]  ;;  %s1799_s20 = smov 24   ;;  %s1800_s21 = smov 56   ;;  %vm423_vm1 = vcmask 130048  }
  0x22   :  { %v196_v4 = vld [vmem:[#allocation5 + $0xf8] sm:$0xff]  ;;  %229 = vmatpush.msra.mxu0 %v180_v3  ;;  %v195_v8 = vld [vmem:[#allocation5 + $0xf0] sm:$0xff]  ;;  %288 = vmatpush.msra.mxu2 %v211_v1  ;;  %v178_v10 = vld [vmem:[#allocation5 + $0x68] sm:$0xff]  ;;  %s1801_s22 = smov 48   ;;  %s1802_s24 = smov 16   ;;  %vm425_vm2 = vcmask 195584  }
  0x23   :  { %258 = vmatpush.msra.mxu1 %v196_v4  ;;  %317 = vmatpush.msra.mxu3 %v227_v6  ;;  %v209_v11 = vld [vmem:[#allocation5 + $0x160] sm:$0xff]  ;;  %v194_v12 = vld [vmem:[#allocation5 + $0xe8] sm:$0xff]  ;;  %v208_v16 = vld [vmem:[#allocation5 + $0x158] sm:$0xff]  ;;  %s1803_s25 = smov 80   ;;  %s1804_s26 = smov 72   ;;  %vm427_vm3 = vcmask 261120  }
  0x24   :  { %230 = vmatpush.msra.mxu0 %v179_v7  ;;  %v225_v13 = vld [vmem:[#allocation5 + $0x1e0] sm:$0xff]  ;;  %289 = vmatpush.msra.mxu2 %v210_v5  ;;  %v224_v17 = vld [vmem:[#allocation5 + $0x1d8] sm:$0xff]  ;;  %v207_v20 = vld [vmem:[#allocation5 + $0x150] sm:$0xff]  ;;  %s1805_s0 = smov 40   ;;  %s1806_s27 = smov 104   ;;  %vm429_vm4 = vcmask 326656  }
  0x25   :  { %259 = vmatpush.msra.mxu1 %v195_v8  ;;  %318 = vmatpush.msra.mxu3 %v226_v9  ;;  %v177_v14 = vld [vmem:[#allocation5 + $0x60] sm:$0xff]  ;;  %v176_v18 = vld [vmem:[#allocation5 + $0x58] sm:$0xff]  ;;  %v223_v21 = vld [vmem:[#allocation5 + $0x1d0] sm:$0xff]  ;;  %s1807_s28 = smov 88   ;;  %vm431_vm5 = vcmask 392192   ;;  %vm433_vm6 = vcmask 457728  }
  0x26   :  { %v193_v15 = vld [vmem:[#allocation5 + $0xe0] sm:$0xff]  ;;  %231 = vmatpush.msra.mxu0 %v178_v10  ;;  %290 = vmatpush.msra.mxu2 %v209_v11  ;;  %v192_v19 = vld [vmem:[#allocation5 + $0xd8] sm:$0xff]  ;;  %v175_v22 = vld [vmem:[#allocation5 + $0x50] sm:$0xff]  ;;  %vm435_vm7 = vcmask 523264   ;;  %vm437_vm8 = vcmask 588800   ;;  %vm439_vm9 = vcmask 654336  }
  0x27   :  { %260 = vmatpush.msra.mxu1 %v194_v12  ;;  %319 = vmatpush.msra.mxu3 %v225_v13  ;;  %v191_v23 = vld [vmem:[#allocation5 + $0xd0] sm:$0xff]  ;;  %v206_v24 = vld [vmem:[#allocation5 + $0x148] sm:$0xff]  ;;  %v205_v28 = vld [vmem:[#allocation5 + $0x140] sm:$0xff]  ;;  %vm441_vm10 = vcmask 719872   ;;  %vm443_vm11 = vcmask 785408   ;;  %vm2397_vm12 = vcmask 850944  }
  0x28   :  { %232 = vmatpush.msra.mxu0 %v177_v14  ;;  %291 = vmatpush.msra.mxu2 %v208_v16  ;;  %v222_v25 = vld [vmem:[#allocation5 + $0x1c8] sm:$0xff]  ;;  %v221_v29 = vld [vmem:[#allocation5 + $0x1c0] sm:$0xff]  ;;  %v204_v32 = vld [vmem:[#allocation5 + $0x138] sm:$0xff]  ;;  %vm2396_vm13 = vcmask 916480   ;;  %vm2395_vm14 = vcmask 982016   ;;  %s1496_s18 = sshll.u32 %s2394_s12, 4  ;;  %s1497_s18 = int_to_ptr.hbm [resolvable:$true] %s1496_s18 }
  0x29   :  { %261 = vmatpush.msra.mxu1 %v193_v15  ;;  %320 = vmatpush.msra.mxu3 %v224_v17  ;;  %v174_v26 = vld [vmem:[#allocation5 + $0x48] sm:$0xff]  ;;  %v173_v30 = vld [vmem:[#allocation5 + $0x40] sm:$0xff]  ;;  %v220_v33 = vld [vmem:[#allocation5 + $0x1b8] sm:$0xff] }
  0x2a   :  { %233 = vmatpush.msra.mxu0 %v176_v18  ;;  %292 = vmatpush.msra.mxu2 %v207_v20  ;;  %v190_v27 = vld [vmem:[#allocation5 + $0xc8] sm:$0xff]  ;;  %v189_v31 = vld [vmem:[#allocation5 + $0xc0] sm:$0xff]  ;;  %v172_v34 = vld [vmem:[#allocation5 + $0x38] sm:$0xff] }
  0x2b   :  { %262 = vmatpush.msra.mxu1 %v192_v19  ;;  %321 = vmatpush.msra.mxu3 %v223_v21  ;;  %v188_v35 = vld [vmem:[#allocation5 + $0xb8] sm:$0xff]  ;;  %v203_v36 = vld [vmem:[#allocation5 + $0x130] sm:$0xff]  ;;  %v202_v40 = vld [vmem:[#allocation5 + $0x128] sm:$0xff] }
  0x2c   :  { %234 = vmatpush.msra.mxu0 %v175_v22  ;;  %293 = vmatpush.msra.mxu2 %v206_v24  ;;  %v219_v37 = vld [vmem:[#allocation5 + $0x1b0] sm:$0xff]  ;;  %v218_v41 = vld [vmem:[#allocation5 + $0x1a8] sm:$0xff]  ;;  %v201_v44 = vld [vmem:[#allocation5 + $0x120] sm:$0xff] }
  0x2d   :  { %263 = vmatpush.msra.mxu1 %v191_v23  ;;  %322 = vmatpush.msra.mxu3 %v222_v25  ;;  %v171_v38 = vld [vmem:[#allocation5 + $0x30] sm:$0xff]  ;;  %v170_v42 = vld [vmem:[#allocation5 + $0x28] sm:$0xff]  ;;  %v217_v45 = vld [vmem:[#allocation5 + $0x1a0] sm:$0xff] }
  0x2e   :  { %235 = vmatpush.msra.mxu0 %v174_v26  ;;  %294 = vmatpush.msra.mxu2 %v205_v28  ;;  %v187_v39 = vld [vmem:[#allocation5 + $0xb0] sm:$0xff]  ;;  %v186_v43 = vld [vmem:[#allocation5 + $0xa8] sm:$0xff]  ;;  %v169_v46 = vld [vmem:[#allocation5 + $0x20] sm:$0xff] }
  0x2f   :  { %264 = vmatpush.msra.mxu1 %v190_v27  ;;  %323 = vmatpush.msra.mxu3 %v221_v29  ;;  %v185_v47 = vld [vmem:[#allocation5 + $0xa0] sm:$0xff]  ;;  %v200_v48 = vld [vmem:[#allocation5 + $0x118] sm:$0xff]  ;;  %v199_v52 = vld [vmem:[#allocation5 + $0x110] sm:$0xff] }
  0x30   :  { %236 = vmatpush.msra.mxu0 %v173_v30  ;;  %295 = vmatpush.msra.mxu2 %v204_v32  ;;  %v216_v49 = vld [vmem:[#allocation5 + $0x198] sm:$0xff]  ;;  %v215_v53 = vld [vmem:[#allocation5 + $0x190] sm:$0xff]  ;;  %v198_v56 = vld [vmem:[#allocation5 + $0x108] sm:$0xff] }
  0x31   :  { %265 = vmatpush.msra.mxu1 %v189_v31  ;;  %324 = vmatpush.msra.mxu3 %v220_v33  ;;  %v168_v50 = vld [vmem:[#allocation5 + $0x18] sm:$0xff]  ;;  %v167_v54 = vld [vmem:[#allocation5 + $0x10] sm:$0xff]  ;;  %v214_v57 = vld [vmem:[#allocation5 + $0x188] sm:$0xff] }
  0x32   :  { %237 = vmatpush.msra.mxu0 %v172_v34  ;;  %296 = vmatpush.msra.mxu2 %v203_v36  ;;  %v184_v51 = vld [vmem:[#allocation5 + $0x98] sm:$0xff]  ;;  %v183_v55 = vld [vmem:[#allocation5 + $0x90] sm:$0xff]  ;;  %v166_v58 = vld [vmem:[#allocation5 + $0x8] sm:$0xff] }
  0x33   :  { %266 = vmatpush.msra.mxu1 %v188_v35  ;;  %325 = vmatpush.msra.mxu3 %v219_v37  ;;  %v182_v59 = vld [vmem:[#allocation5 + $0x88] sm:$0xff]  ;;  %v197_v60 = vld [vmem:[#allocation5 + $0x100] sm:$0xff]  ;;  %v151_v62 = vld [vmem:[#allocation2 + $0x10] sm:$0xff] }
  0x34   :  { %238 = vmatpush.msra.mxu0 %v171_v38  ;;  %297 = vmatpush.msra.mxu2 %v202_v40  ;;  %v213_v61 = vld [vmem:[#allocation5 + $0x180] sm:$0xff]  ;;  %v152_v63 = vld [vmem:[#allocation2 + $0x18] sm:$0xff]  ;;  %v150_v3 = vld [vmem:[#allocation2 + $0x8] sm:$0xff] }
  0x35   :  { %267 = vmatpush.msra.mxu1 %v187_v39  ;;  %326 = vmatpush.msra.mxu3 %v218_v41  ;;  %v165_v0 = vld [vmem:[#allocation5] sm:$0xff]  ;;  %v155_v4 = vld [vmem:[#allocation2 + $0x30] sm:$0xff]  ;;  %v156_v5 = vld [vmem:[#allocation2 + $0x38] sm:$0xff] }
  0x36   :  { %239 = vmatpush.msra.mxu0 %v170_v42  ;;  %298 = vmatpush.msra.mxu2 %v201_v44  ;;  %v181_v1 = vld [vmem:[#allocation5 + $0x80] sm:$0xff]  ;;  %v154_v7 = vld [vmem:[#allocation2 + $0x28] sm:$0xff]  ;;  %v159_v8 = vld [vmem:[#allocation2 + $0x50] sm:$0xff] }
  0x37   :  { %268 = vmatpush.msra.mxu1 %v186_v43  ;;  %327 = vmatpush.msra.mxu3 %v217_v45  ;;  %v149_v2 = vld [vmem:[#allocation2] sm:$0xff]  ;;  %v160_v9 = vld [vmem:[#allocation2 + $0x58] sm:$0xff]  ;;  %v158_v11 = vld [vmem:[#allocation2 + $0x48] sm:$0xff] }
  0x38   :  { %240 = vmatpush.msra.mxu0 %v169_v46  ;;  %299 = vmatpush.msra.mxu2 %v200_v48  ;;  %v153_v6 = vld [vmem:[#allocation2 + $0x20] sm:$0xff]  ;;  %v163_v12 = vld [vmem:[#allocation2 + $0x70] sm:$0xff]  ;;  %v164_v13 = vld [vmem:[#allocation2 + $0x78] sm:$0xff] }
  0x39   :  { %269 = vmatpush.msra.mxu1 %v185_v47  ;;  %328 = vmatpush.msra.mxu3 %v216_v49  ;;  %v157_v10 = vld [vmem:[#allocation2 + $0x40] sm:$0xff]  ;;  %v162_v15 = vld [vmem:[#allocation2 + $0x68] sm:$0xff] }
  0x3a   :  { %241 = vmatpush.msra.mxu0 %v168_v50  ;;  %300 = vmatpush.msra.mxu2 %v199_v52  ;;  %v161_v14 = vld [vmem:[#allocation2 + $0x60] sm:$0xff] }
  0x3b   :  { %270 = vmatpush.msra.mxu1 %v184_v51  ;;  %329 = vmatpush.msra.mxu3 %v215_v53 }
  0x3c   :  { %242 = vmatpush.msra.mxu0 %v167_v54  ;;  %301 = vmatpush.msra.mxu2 %v198_v56 }
  0x3d   :  { %271 = vmatpush.msra.mxu1 %v183_v55  ;;  %330 = vmatpush.msra.mxu3 %v214_v57 }
  0x3e   :  { %243 = vmatpush.msra.mxu0 %v166_v58  ;;  %302 = vmatpush.msra.mxu2 %v197_v60 }
  0x3f   :  { %272 = vmatpush.msra.mxu1 %v182_v59  ;;  %331 = vmatpush.msra.mxu3 %v213_v61 }
  0x40   :  { %303 = vmatmul.f32.vlgmr.msra.gmra.mxu2 %v151_v62  ;;  %332 = vmatmul.f32.vlgmr.msra.gmra.mxu3 %v152_v63 }
  0x41   :  { %244 = vmatpush.msra.mxu0 %v165_v0  ;;  %273 = vmatpush.msra.mxu1 %v181_v1 }
  0x42   :  { %245 = vmatmul.f32.vlgmr.msra.gmra.mxu0 %v149_v2  ;;  %274 = vmatmul.f32.vlgmr.msra.gmra.mxu1 %v150_v3 }
  0x48   :  { %306 = vmatmul.f32.gmra.mxu2 %v155_v4  ;;  %335 = vmatmul.f32.gmra.mxu3 %v156_v5 }
  0x4a   :  { %248 = vmatmul.f32.gmra.mxu0 %v153_v6  ;;  %277 = vmatmul.f32.gmra.mxu1 %v154_v7 }
  0x50   :  { %309 = vmatmul.f32.gmra.mxu2 %v159_v8  ;;  %338 = vmatmul.f32.gmra.mxu3 %v160_v9 }
  0x52   :  { %251 = vmatmul.f32.gmra.mxu0 %v157_v10  ;;  %280 = vmatmul.f32.gmra.mxu1 %v158_v11 }
  0x58   :  { %312 = vmatmul.f32.gmra.mxu2 %v163_v12  ;;  %341 = vmatmul.f32.gmra.mxu3 %v164_v13 }
  0x5a   :  { %254 = vmatmul.f32.gmra.mxu0 %v161_v14  ;;  %283 = vmatmul.f32.gmra.mxu1 %v162_v15 }
  0xbf   :  { %v246_v16 = vpop.f32.mrf.mxu0  ;;  %v275_v17 = vpop.f32.mrf.mxu1 }
  0xc0   :  { %v276_v27 = vadd.f32 %v275_v17, %v246_v16 }
  0xc3   :  { %v304_v18 = vpop.f32.mrf.mxu2  ;;  %v333_v19 = vpop.f32.mrf.mxu3 }
  0xc4   :  { %v305_v32 = vadd.f32 %v304_v18, %v276_v27 }
  0xc6   :  { %v1916_v38 = vadd.f32 %v333_v19, %v305_v32 }
  0xc7   :  { %v249_v20 = vpop.f32.mrf.mxu0  ;;  %v278_v21 = vpop.f32.mrf.mxu1 }
  0xc8   :  { %v279_v26 = vadd.f32 %v278_v21, %v249_v20 }
  0xcb   :  { %v307_v22 = vpop.f32.mrf.mxu2  ;;  %v336_v23 = vpop.f32.mrf.mxu3 }
  0xcc   :  { %v308_v31 = vadd.f32 %v307_v22, %v279_v26 }
  0xce   :  { %v1914_v36 = vadd.f32 %v336_v23, %v308_v31 }
  0xcf   :  { %v252_v24 = vpop.f32.mrf.mxu0  ;;  %v281_v25 = vpop.f32.mrf.mxu1 }
  0xd0   :  { %v282_v28 = vadd.f32 %v281_v25, %v252_v24  ;;  %v345_v42 = vadd.f32 %v1914_v36, %v1916_v38 }
  0xd3   :  { %v310_v29 = vpop.f32.mrf.mxu2  ;;  %v339_v30 = vpop.f32.mrf.mxu3 }
  0xd4   :  { %v311_v33 = vadd.f32 %v310_v29, %v282_v28 }
  0xd6   :  { %v1918_v39 = vadd.f32 %v339_v30, %v311_v33 }
  0xd7   :  { %v255_v34 = vpop.f32.mrf.mxu0  ;;  %v284_v35 = vpop.f32.mrf.mxu1 }
  0xd8   :  { %v285_v37 = vadd.f32 %v284_v35, %v255_v34  ;;  %v346_v44 = vadd.f32 %v345_v42, %v1918_v39 }
  0xdb   :  { %v313_v40 = vpop.f32.mrf.mxu2  ;;  %v342_v41 = vpop.f32.mrf.mxu3 }
  0xdc   :  { %v314_v43 = vadd.f32 %v313_v40, %v285_v37 }
  0xde   :  { %v1923_v45 = vadd.f32 %v342_v41, %v314_v43 }
  0xe0   :  { %v347_v46 = vadd.f32 %v346_v44, %v1923_v45 }
  0xe2   :  { %v348_v47 = vrot.slane %v347_v46, 4 }
  0xe4   :  { %v349_v48 = vadd.f32 %v348_v47, %v347_v46 }
  0xe6   :  { %v350_v49 = vrot.slane %v349_v48, 2 }
  0xe8   :  { %v351_v50 = vadd.f32 %v350_v49, %v349_v48 }
  0xea   :  { %v352_v51 = vrot.slane %v351_v50, 1 }
  0xec   :  { %v353_v52 = vadd.f32 %v352_v51, %v351_v50 }
  0xee   :  { %355 = vrot.lane.b32.xlu0 %v353_v52, %s1795_s6 }
 0x160   :  { %v356_v53 = vpop.permute.xlu0 %355 }
 0x161   :  { %v358_v54 = vadd.f32 %v356_v53, %v353_v52 }
 0x163   :  { %360 = vrot.lane.b32.xlu0 %v358_v54, %s1796_s9 }
 0x1d5   :  { %v361_v55 = vpop.permute.xlu0 %360 }
 0x1d6   :  { %v363_v56 = vadd.f32 %v361_v55, %v358_v54 }
 0x1d8   :  { %365 = vrot.lane.b32.xlu1 %v363_v56, %s1797_s29 }
 0x24a   :  { %v366_v57 = vpop.permute.xlu1 %365 }
 0x24b   :  { %v368_v58 = vadd.f32 %v366_v57, %v363_v56 }
 0x24d   :  { %370 = vrot.lane.b32.xlu1 %v368_v58, %s1798_s19 }
 0x2bf   :  { %v371_v59 = vpop.permute.xlu1 %370 }
 0x2c0   :  { %v373_v60 = vadd.f32 %v371_v59, %v368_v58 }
 0x2c2   :  { %v374_v61 = vmul.f32 0.001953125, %v373_v60 }
 0x2c4   :  { %385 = vrot.lane.b32.xlu1 %v374_v61, %s1791_s8  ;;  %382 = vrot.lane.b32.xlu0 %v374_v61, %s1799_s20 }
 0x2c5   :  { %376 = vrot.lane.b32.xlu2 %v374_v61, %s1786_s30 }
 0x2cc   :  { %394 = vrot.lane.b32.xlu1 %v374_v61, %s1800_s21  ;;  %391 = vrot.lane.b32.xlu0 %v374_v61, %s1801_s22 }
 0x2cd   :  { %379 = vrot.lane.b32.xlu2 %v374_v61, %s1802_s24 }
 0x2d4   :  { %403 = vrot.lane.b32.xlu1 %v374_v61, %s1803_s25  ;;  %400 = vrot.lane.b32.xlu0 %v374_v61, %s1804_s26 }
 0x2d5   :  { %388 = vrot.lane.b32.xlu2 %v374_v61, %s1805_s0 }
 0x2dc   :  { %412 = vrot.lane.b32.xlu1 %v374_v61, %s1806_s27  ;;  %409 = vrot.lane.b32.xlu0 %v374_v61, %s1796_s9 }
 0x2dd   :  { %397 = vrot.lane.b32.xlu2 %v374_v61, %s1795_s6 }
 0x2e4   :  { %418 = vrot.lane.b32.xlu0 %v374_v61, %s1798_s19 }
 0x2e5   :  { %406 = vrot.lane.b32.xlu2 %v374_v61, %s1807_s28 }
 0x2ed   :  { %415 = vrot.lane.b32.xlu2 %v374_v61, %s1797_s29 }
 0x31f   :  { %v377_v62 = vpop.permute.xlu2 %376 }
 0x320   :  { %v422_v3 = vsel %vm421_vm0, %v374_v61, %v377_v62  ;;  %v490_v61 = vld [vmem:[%s2384_s2] sm:$0x1] }
 0x327   :  { %v380_v63 = vpop.permute.xlu2 %379 }
 0x328   :  { %v424_v4 = vsel %vm423_vm1, %v422_v3, %v380_v63  ;;  %v715_v3 = vld [vmem:[#allocation8 + $0x70] sm:$0xff] }
 0x32f   :  { %v389_v2 = vpop.permute.xlu2 %388 }
 0x336   :  { %v386_v0 = vpop.permute.xlu1 %385  ;;  %v383_v1 = vpop.permute.xlu0 %382 }
 0x337   :  { %v426_v5 = vsel %vm425_vm2, %v424_v4, %v383_v1  ;;  %v398_v9 = vpop.permute.xlu2 %397  ;;  %v790_v4 = vld [vmem:[#allocation10 + $0x78] sm:$0xff] }
 0x338   :  { %v428_v6 = vsel %vm427_vm3, %v426_v5, %v386_v0  ;;  %791 = vmatpush.msrb.mxu2 %v790_v4  ;;  %v789_v5 = vld [vmem:[#allocation10 + $0x70] sm:$0xff] }
 0x339   :  { %v430_v10 = vsel %vm429_vm4, %v428_v6, %v389_v2  ;;  %v716_v2 = vld [vmem:[#allocation8 + $0x78] sm:$0xff]  ;;  %v714_v6 = vld [vmem:[#allocation8 + $0x68] sm:$0xff] }
 0x33a   :  { %717 = vmatpush.msrb.mxu0 %v716_v2  ;;  %792 = vmatpush.msrb.mxu2 %v789_v5 }
 0x33c   :  { %718 = vmatpush.msrb.mxu0 %v715_v3 }
 0x33e   :  { %v395_v7 = vpop.permute.xlu1 %394  ;;  %v392_v8 = vpop.permute.xlu0 %391  ;;  %719 = vmatpush.msrb.mxu0 %v714_v6 }
 0x33f   :  { %v432_v11 = vsel %vm431_vm5, %v430_v10, %v392_v8  ;;  %v407_v17 = vpop.permute.xlu2 %406  ;;  %v713_v8 = vld [vmem:[#allocation8 + $0x60] sm:$0xff]  ;;  %v699_v10 = vld [vmem:[#allocation7 + $0x70] sm:$0xff] }
 0x340   :  { %v434_v12 = vsel %vm433_vm6, %v432_v11, %v395_v7  ;;  %v700_v7 = vld [vmem:[#allocation7 + $0x78] sm:$0xff]  ;;  %720 = vmatpush.msrb.mxu0 %v713_v8 }
 0x341   :  { %v436_v15 = vsel %vm435_vm7, %v434_v12, %v398_v9  ;;  %746 = vmatpush.msrb.mxu1 %v700_v7  ;;  %v788_v9 = vld [vmem:[#allocation10 + $0x68] sm:$0xff]  ;;  %v712_v11 = vld [vmem:[#allocation8 + $0x58] sm:$0xff]  ;;  %v787_v12 = vld [vmem:[#allocation10 + $0x60] sm:$0xff] }
 0x342   :  { %793 = vmatpush.msrb.mxu2 %v788_v9  ;;  %721 = vmatpush.msrb.mxu0 %v712_v11 }
 0x343   :  { %747 = vmatpush.msrb.mxu1 %v699_v10 }
 0x344   :  { %794 = vmatpush.msrb.mxu2 %v787_v12 }
 0x346   :  { %v404_v13 = vpop.permute.xlu1 %403  ;;  %v401_v14 = vpop.permute.xlu0 %400 }
 0x347   :  { %v438_v16 = vsel %vm437_vm8, %v436_v15, %v401_v14  ;;  %v416_v24 = vpop.permute.xlu2 %415  ;;  %v711_v14 = vld [vmem:[#allocation8 + $0x50] sm:$0xff]  ;;  %v786_v15 = vld [vmem:[#allocation10 + $0x58] sm:$0xff] }
 0x348   :  { %v440_v18 = vsel %vm439_vm9, %v438_v16, %v404_v13  ;;  %v698_v13 = vld [vmem:[#allocation7 + $0x68] sm:$0xff]  ;;  %v697_v16 = vld [vmem:[#allocation7 + $0x60] sm:$0xff]  ;;  %722 = vmatpush.msrb.mxu0 %v711_v14  ;;  %795 = vmatpush.msrb.mxu2 %v786_v15 }
 0x349   :  { %v442_v20 = vsel %vm441_vm10, %v440_v18, %v407_v17  ;;  %748 = vmatpush.msrb.mxu1 %v698_v13  ;;  %v710_v17 = vld [vmem:[#allocation8 + $0x48] sm:$0xff]  ;;  %v785_v18 = vld [vmem:[#allocation10 + $0x50] sm:$0xff]  ;;  %v582_v13 = vlaneseq }
 0x34a   :  { %723 = vmatpush.msrb.mxu0 %v710_v17  ;;  %796 = vmatpush.msrb.mxu2 %v785_v18 }
 0x34b   :  { %749 = vmatpush.msrb.mxu1 %v697_v16 }
 0x34e   :  { %v410_v19 = vpop.permute.xlu0 %409  ;;  %v413_v21 = vpop.permute.xlu1 %412 }
 0x34f   :  { %v444_v22 = vsel %vm443_vm11, %v442_v20, %v410_v19  ;;  %v696_v20 = vld [vmem:[#allocation7 + $0x58] sm:$0xff] }
 0x350   :  { %v446_v23 = vsel %vm2397_vm12, %v444_v22, %v413_v21  ;;  %750 = vmatpush.msrb.mxu1 %v696_v20  ;;  %v709_v21 = vld [vmem:[#allocation8 + $0x40] sm:$0xff]  ;;  %v784_v22 = vld [vmem:[#allocation10 + $0x48] sm:$0xff] }
 0x351   :  { %v448_v26 = vsel %vm2396_vm13, %v446_v23, %v416_v24  ;;  %v695_v23 = vld [vmem:[#allocation7 + $0x50] sm:$0xff]  ;;  %724 = vmatpush.msrb.mxu0 %v709_v21  ;;  %797 = vmatpush.msrb.mxu2 %v784_v22  ;;  %v708_v24 = vld [vmem:[#allocation8 + $0x38] sm:$0xff] }
 0x352   :  { %751 = vmatpush.msrb.mxu1 %v695_v23 }
 0x353   :  { %725 = vmatpush.msrb.mxu0 %v708_v24  ;;  %v1558_v24 = vld [vmem:[%s2385_s3] ss:$0 sm:$0xff] }
 0x356   :  { %v419_v25 = vpop.permute.xlu0 %418 }
 0x357   :  { %v450_v27 = vsel %vm2395_vm14, %v448_v26, %v419_v25  ;;  %v783_v25 = vld [vmem:[#allocation10 + $0x40] sm:$0xff]  ;;  %v694_v26 = vld [vmem:[#allocation7 + $0x48] sm:$0xff] }
 0x358   :  { %v451_v28 = vperm.slane %v450_v27, 0  ;;  %v707_v27 = vld [vmem:[#allocation8 + $0x30] sm:$0xff]  ;;  %798 = vmatpush.msrb.mxu2 %v783_v25  ;;  %752 = vmatpush.msrb.mxu1 %v694_v26 }
 0x359   :  { %726 = vmatpush.msrb.mxu0 %v707_v27 }
 0x35a   :  { %v1961_v29 = vsub.f32 %v1916_v38, %v451_v28  ;;  %v1964_v30 = vsub.f32 %v1914_v36, %v451_v28  ;;  %v1967_v31 = vsub.f32 %v1918_v39, %v451_v28  ;;  %v1970_v32 = vsub.f32 %v1923_v45, %v451_v28  ;;  %v782_v28 = vld [vmem:[#allocation10 + $0x38] sm:$0xff] }
 0x35b   :  { %799 = vmatpush.msrb.mxu2 %v782_v28 }
 0x35c   :  { %v456_v33 = vmul.f32 %v1961_v29, %v1961_v29  ;;  %v457_v34 = vmul.f32 %v1964_v30, %v1964_v30  ;;  %v458_v35 = vmul.f32 %v1967_v31, %v1967_v31  ;;  %v459_v36 = vmul.f32 %v1970_v32, %v1970_v32 }
 0x35e   :  { %v460_v37 = vadd.f32 %v457_v34, %v456_v33  ;;  %v693_v33 = vld [vmem:[#allocation7 + $0x40] sm:$0xff]  ;;  %v706_v34 = vld [vmem:[#allocation8 + $0x28] sm:$0xff] }
 0x35f   :  { %753 = vmatpush.msrb.mxu1 %v693_v33  ;;  %727 = vmatpush.msrb.mxu0 %v706_v34 }
 0x360   :  { %v461_v38 = vadd.f32 %v460_v37, %v458_v35  ;;  %v781_v35 = vld [vmem:[#allocation10 + $0x30] sm:$0xff] }
 0x361   :  { %800 = vmatpush.msrb.mxu2 %v781_v35 }
 0x362   :  { %v462_v40 = vadd.f32 %v461_v38, %v459_v36 }
 0x364   :  { %v463_v39 = vrot.slane %v462_v40, 4 }
 0x366   :  { %v464_v41 = vadd.f32 %v463_v39, %v462_v40  ;;  %v692_v40 = vld [vmem:[#allocation7 + $0x38] sm:$0xff]  ;;  %v705_v39 = vld [vmem:[#allocation8 + $0x20] sm:$0xff] }
 0x367   :  { %754 = vmatpush.msrb.mxu1 %v692_v40  ;;  %728 = vmatpush.msrb.mxu0 %v705_v39 }
 0x368   :  { %v465_v42 = vrot.slane %v464_v41, 2 }
 0x36a   :  { %v466_v43 = vadd.f32 %v465_v42, %v464_v41  ;;  %v780_v41 = vld [vmem:[#allocation10 + $0x28] sm:$0xff]  ;;  %v691_v42 = vld [vmem:[#allocation7 + $0x30] sm:$0xff] }
 0x36b   :  { %801 = vmatpush.msrb.mxu2 %v780_v41  ;;  %755 = vmatpush.msrb.mxu1 %v691_v42 }
 0x36c   :  { %v467_v44 = vrot.slane %v466_v43, 1 }
 0x36e   :  { %v468_v45 = vadd.f32 %v467_v44, %v466_v43  ;;  %v704_v44 = vld [vmem:[#allocation8 + $0x18] sm:$0xff] }
 0x36f   :  { %729 = vmatpush.msrb.mxu0 %v704_v44 }
 0x370   :  { %470 = vrot.lane.b32.xlu1 %v468_v45, %s1795_s6 }
 0x3e2   :  { %v471_v46 = vpop.permute.xlu1 %470 }
 0x3e3   :  { %v473_v47 = vadd.f32 %v471_v46, %v468_v45  ;;  %v779_v46 = vld [vmem:[#allocation10 + $0x20] sm:$0xff] }
 0x3e4   :  { %802 = vmatpush.msrb.mxu2 %v779_v46 }
 0x3e5   :  { %475 = vrot.lane.b32.xlu2 %v473_v47, %s1796_s9 }
 0x43f   :  { %v476_v48 = vpop.permute.xlu2 %475 }
 0x440   :  { %v478_v49 = vadd.f32 %v476_v48, %v473_v47  ;;  %v690_v47 = vld [vmem:[#allocation7 + $0x28] sm:$0xff]  ;;  %v703_v48 = vld [vmem:[#allocation8 + $0x10] sm:$0xff] }
 0x441   :  { %756 = vmatpush.msrb.mxu1 %v690_v47  ;;  %730 = vmatpush.msrb.mxu0 %v703_v48 }
 0x442   :  { %480 = vrot.lane.b32.xlu0 %v478_v49, %s1797_s29 }
 0x4b4   :  { %v481_v50 = vpop.permute.xlu0 %480 }
 0x4b5   :  { %v483_v51 = vadd.f32 %v481_v50, %v478_v49  ;;  %v778_v49 = vld [vmem:[#allocation10 + $0x18] sm:$0xff]  ;;  %v689_v50 = vld [vmem:[#allocation7 + $0x20] sm:$0xff] }
 0x4b6   :  { %803 = vmatpush.msrb.mxu2 %v778_v49  ;;  %757 = vmatpush.msrb.mxu1 %v689_v50 }
 0x4b7   :  { %485 = vrot.lane.b32.xlu1 %v483_v51, %s1798_s19 }
 0x529   :  { %v486_v52 = vpop.permute.xlu1 %485 }
 0x52a   :  { %v488_v53 = vadd.f32 %v486_v52, %v483_v51  ;;  %v702_v51 = vld [vmem:[#allocation8 + $0x8] sm:$0xff]  ;;  %v777_v52 = vld [vmem:[#allocation10 + $0x10] sm:$0xff] }
 0x52b   :  { %731 = vmatpush.msrb.mxu0 %v702_v51  ;;  %804 = vmatpush.msrb.mxu2 %v777_v52 }
 0x52c   :  { %v489_v54 = vmul.f32 0.001953125, %v488_v53  ;;  %v688_v53 = vld [vmem:[#allocation7 + $0x18] sm:$0xff] }
 0x52d   :  { %758 = vmatpush.msrb.mxu1 %v688_v53 }
 0x52e   :  { %v491_v55 = vadd.f32 1e-05, %v489_v54 }
 0x530   :  { %1560 = vrsqrt.f32 %v491_v55  ;;  %vm498_vm14 = vweird.f32 %v491_v55 }
 0x536   :  { %v1561_v56 = vpop.eup %1560 }
 0x537   :  { %v493_v57 = vmul.f32 %v1561_v56, %v491_v55  ;;  %vm499_vm15 = vweird.f32 %v1561_v56 }
 0x538   :  { %vm500_vm13 = vmor %vm498_vm14, %vm499_vm15  ;;  %vm2399_vm14 = vcmask 982016  }
 0x539   :  { %v494_v58 = vmul.f32 %v1561_v56, %v493_v57  ;;  %v701_v57 = vld [vmem:[#allocation8] sm:$0xff] }
 0x53a   :  { %732 = vmatpush.msrb.mxu0 %v701_v57 }
 0x53b   :  { %v495_v59 = vmul.f32 0.5, %v494_v58  ;;  %v776_v58 = vld [vmem:[#allocation10 + $0x8] sm:$0xff] }
 0x53c   :  { %805 = vmatpush.msrb.mxu2 %v776_v58 }
 0x53d   :  { %v496_v60 = vsub.f32 1.5, %v495_v59 }
 0x53f   :  { %v497_v62 = vmul.f32 %v1561_v56, %v496_v60 }
 0x541   :  { %v501_v63 = vsel %vm500_vm13, %v1561_v56, %v497_v62  ;;  %v775_v62 = vld [vmem:[#allocation10] sm:$0xff]  ;;  %vm2398_vm13 = vcmask 916480  }
 0x542   :  { %v1987_v0 = vmul.f32 %v501_v63, %v490_v61  ;;  %v687_v61 = vld [vmem:[#allocation7 + $0x10] sm:$0xff]  ;;  %v686_v63 = vld [vmem:[#allocation7 + $0x8] sm:$0xff]  ;;  %806 = vmatpush.msrb.mxu2 %v775_v62 }
 0x543   :  { %759 = vmatpush.msrb.mxu1 %v687_v61 }
 0x544   :  { %v504_v1 = vperm.slane %v1987_v0, 0 }
 0x545   :  { %760 = vmatpush.msrb.mxu1 %v686_v63 }
 0x546   :  { %511 = vrot.lane.b32.xlu1 %v504_v1, %s1799_s20  ;;  %508 = vrot.lane.b32.xlu0 %v504_v1, %s1802_s24 }
 0x547   :  { %505 = vrot.lane.b32.xlu2 %v504_v1, %s1786_s30 }
 0x54e   :  { %520 = vrot.lane.b32.xlu1 %v504_v1, %s1801_s22  ;;  %517 = vrot.lane.b32.xlu0 %v504_v1, %s1805_s0 }
 0x54f   :  { %514 = vrot.lane.b32.xlu2 %v504_v1, %s1791_s8 }
 0x556   :  { %529 = vrot.lane.b32.xlu1 %v504_v1, %s1804_s26  ;;  %526 = vrot.lane.b32.xlu0 %v504_v1, %s1795_s6 }
 0x557   :  { %523 = vrot.lane.b32.xlu2 %v504_v1, %s1800_s21 }
 0x55e   :  { %538 = vrot.lane.b32.xlu1 %v504_v1, %s1796_s9  ;;  %535 = vrot.lane.b32.xlu0 %v504_v1, %s1807_s28 }
 0x55f   :  { %532 = vrot.lane.b32.xlu2 %v504_v1, %s1803_s25 }
 0x566   :  { %547 = vrot.lane.b32.xlu1 %v504_v1, %s1798_s19  ;;  %544 = vrot.lane.b32.xlu0 %v504_v1, %s1797_s29 }
 0x567   :  { %541 = vrot.lane.b32.xlu2 %v504_v1, %s1806_s27  ;;  %v685_v1 = vld [vmem:[#allocation7] sm:$0xff] }
 0x568   :  { %761 = vmatpush.msrb.mxu1 %v685_v1 }
 0x5a1   :  { %v506_v19 = vpop.permute.xlu2 %505 }
 0x5a2   :  { %v550_v43 = vsel %vm421_vm0, %v1987_v0, %v506_v19  ;;  %v2019_v19 = vshrl.u32 %v582_v13, 7 }
 0x5a4   :  { %v591_v22 = vand.u32 15, %v2019_v19  ;;  %v584_v33 = vadd.s32 8, %v2019_v19  ;;  %v585_v49 = vadd.s32 16, %v2019_v19 }
 0x5a6   :  { %vm635_vm15 = vcmp.ne.s32.totalorder %v591_v22, 0 }
 0x5a9   :  { %v515_v38 = vpop.permute.xlu2 %514 }
 0x5b1   :  { %v524_v59 = vpop.permute.xlu2 %523 }
 0x5b8   :  { %v512_v37 = vpop.permute.xlu1 %511  ;;  %v509_v36 = vpop.permute.xlu0 %508 }
 0x5b9   :  { %v551_v45 = vsel %vm423_vm1, %v550_v43, %v509_v36  ;;  %v533_v7 = vpop.permute.xlu2 %532 }
 0x5ba   :  { %v552_v54 = vsel %vm425_vm2, %v551_v45, %v512_v37 }
 0x5bb   :  { %v553_v60 = vsel %vm427_vm3, %v552_v54, %v515_v38  ;;  %v605_v54 = vand.u32 15, %v585_v49 }
 0x5c0   :  { %v521_v55 = vpop.permute.xlu1 %520  ;;  %v518_v56 = vpop.permute.xlu0 %517 }
 0x5c1   :  { %v554_v0 = vsel %vm429_vm4, %v553_v60, %v518_v56  ;;  %v542_v15 = vpop.permute.xlu2 %541 }
 0x5c2   :  { %v555_v2 = vsel %vm431_vm5, %v554_v0, %v521_v55  ;;  %v586_v55 = vadd.s32 24, %v2019_v19 }
 0x5c3   :  { %v556_v5 = vsel %vm433_vm6, %v555_v2, %v524_v59 }
 0x5c4   :  { %v612_v59 = vand.u32 15, %v586_v55 }
 0x5c8   :  { %v530_v3 = vpop.permute.xlu1 %529  ;;  %v527_v4 = vpop.permute.xlu0 %526 }
 0x5c9   :  { %v557_v6 = vsel %vm435_vm7, %v556_v5, %v527_v4 }
 0x5ca   :  { %v558_v8 = vsel %vm437_vm8, %v557_v6, %v530_v3 }
 0x5cb   :  { %v559_v11 = vsel %vm439_vm9, %v558_v8, %v533_v7 }
 0x5d0   :  { %v539_v9 = vpop.permute.xlu1 %538  ;;  %v536_v10 = vpop.permute.xlu0 %535 }
 0x5d1   :  { %v560_v12 = vsel %vm441_vm10, %v559_v11, %v536_v10 }
 0x5d2   :  { %v561_v14 = vsel %vm443_vm11, %v560_v12, %v539_v9 }
 0x5d3   :  { %v562_v18 = vsel %vm2397_vm12, %v561_v14, %v542_v15 }
 0x5d8   :  { %v548_v16 = vpop.permute.xlu1 %547  ;;  %v545_v17 = vpop.permute.xlu0 %544 }
 0x5d9   :  { %v563_v20 = vsel %vm2398_vm13, %v562_v18, %v545_v17  ;;  %vm676_vm13 = vcmp.lt.s32.totalorder %v2019_v19, 7 }
 0x5da   :  { %v564_v21 = vsel %vm2399_vm14, %v563_v20, %v548_v16  ;;  %vm663_vm14 = vcmp.lt.s32.totalorder %v2019_v19, 1 }
 0x5db   :  { %v565_v23 = vperm.slane %v564_v21, 0 }
 0x5dd   :  { %v567_v25 = vmul.f32 %v565_v23, %v1964_v30  ;;  %v568_v26 = vmul.f32 %v565_v23, %v1967_v31  ;;  %v569_v27 = vmul.f32 %v565_v23, %v1970_v32  ;;  %v566_v28 = vmul.f32 %v565_v23, %v1961_v29 }
 0x5de   :  { %v1808_v30 = vmov 0.0   ;;  %v598_v31 = vand.u32 15, %v584_v33 }
 0x5df   :  { %v574_v34 = vadd.f32 %v1558_v24, %v566_v28  ;;  %v575_v35 = vadd.f32 %v1558_v24, %v567_v25  ;;  %v577_v37 = vadd.f32 %v1558_v24, %v569_v27  ;;  %v576_v36 = vadd.f32 %v1558_v24, %v568_v26 }
 0x5e0   :  { %v1512_v42 = vsel %vm635_vm15, 1.0, %v1808_v30  ;;  %vm648_vm12 = vcmp.ne.s32.totalorder %v598_v31, 15  ;;  %vm637_vm15 = vcmp.ne.s32.totalorder %v605_v54, 0 }
 0x5e1   :  { %v578_v38 = vmax.f32 %v574_v34, 0.0  ;;  %v579_v40 = vmax.f32 %v575_v35, 0.0  ;;  %v581_v39 = vmax.f32 %v577_v37, 0.0  ;;  %v580_v41 = vmax.f32 %v576_v36, 0.0 }
 0x5e2   :  { %v1514_v50 = vsel %vm648_vm12, 1.0, %v1808_v30  ;;  %v1513_v60 = vsel %vm637_vm15, 1.0, %v1808_v30  ;;  %vm650_vm12 = vcmp.ne.s32.totalorder %v612_v59, 15  ;;  %vm2402_vm15 = vcmask 982016  }
 0x5e3   :  { %v659_v32 = vrot.slane %v578_v38, 7  ;;  %733 = vmatmul.f32.vlgmr.msrb.gmra.mxu0 %v578_v38  ;;  %v672_v29 = vrot.slane %v578_v38, 1  ;;  %v673_v43 = vrot.slane %v579_v40, 1  ;;  %v662_v44 = vrot.slane %v581_v39, 7 }
 0x5e4   :  { %v674_v47 = vrot.slane %v580_v41, 1  ;;  %v660_v52 = vrot.slane %v579_v40, 7  ;;  %v661_v57 = vrot.slane %v580_v41, 7  ;;  %v675_v58 = vrot.slane %v581_v39, 1 }
 0x5e5   :  { %v679_v45 = vsel %vm676_vm13, %v672_v29, %v673_v43  ;;  %v667_v46 = vsel %vm663_vm14, %v662_v44, %v659_v32  ;;  %v1515_v0 = vsel %vm650_vm12, 1.0, %v1808_v30 }
 0x5e6   :  { %807 = vmatmul.f32.vlgmr.msrb.gmra.mxu2 %v679_v45  ;;  %v668_v48 = vmul.f32 %v1512_v42, %v667_v46  ;;  %v678_v51 = vsel %vm676_vm13, %v673_v43, %v674_v47  ;;  %v666_v56 = vsel %vm663_vm14, %v659_v32, %v660_v52  ;;  %v665_v61 = vsel %vm663_vm14, %v660_v52, %v661_v57 }
 0x5e7   :  { %v682_v53 = vmul.f32 %v1514_v50, %v678_v51  ;;  %v677_v62 = vsel %vm676_vm13, %v674_v47, %v675_v58  ;;  %v670_v63 = vmul.f32 %v1513_v60, %v665_v61  ;;  %v680_v1 = vsel %vm676_vm13, %v675_v58, %v672_v29 }
 0x5e8   :  { %762 = vmatmul.f32.vlgmr.msrb.gmra.mxu1 %v668_v48  ;;  %v684_v2 = vmul.f32 %v1515_v0, %v680_v1  ;;  %v664_v3 = vsel %vm663_vm14, %v661_v57, %v662_v44  ;;  %vm2400_vm13 = vcmask 850944   ;;  %vm2401_vm14 = vcmask 916480  }
 0x5eb   :  { %736 = vmatmul.f32.gmra.mxu0 %v579_v40 }
 0x5ee   :  { %810 = vmatmul.f32.gmra.mxu2 %v682_v53 }
 0x5f0   :  { %765 = vmatmul.f32.gmra.mxu1 %v666_v56 }
 0x5f3   :  { %739 = vmatmul.f32.gmra.mxu0 %v580_v41 }
 0x5f6   :  { %813 = vmatmul.f32.gmra.mxu2 %v677_v62 }
 0x5f8   :  { %768 = vmatmul.f32.gmra.mxu1 %v670_v63 }
 0x5fb   :  { %742 = vmatmul.f32.gmra.mxu0 %v581_v39 }
 0x5fe   :  { %816 = vmatmul.f32.gmra.mxu2 %v684_v2 }
 0x600   :  { %771 = vmatmul.f32.gmra.mxu1 %v664_v3 }
 0x660   :  { %v734_v4 = vpop.f32.mrf.mxu0 }
 0x665   :  { %v763_v5 = vpop.f32.mrf.mxu1 }
 0x666   :  { %v764_v14 = vadd.f32 %v763_v5, %v734_v4 }
 0x668   :  { %v737_v7 = vpop.f32.mrf.mxu0 }
 0x669   :  { %v808_v6 = vpop.f32.mrf.mxu2 }
 0x66a   :  { %v2054_v18 = vadd.f32 %v808_v6, %v764_v14 }
 0x66d   :  { %v766_v8 = vpop.f32.mrf.mxu1 }
 0x66e   :  { %v767_v13 = vadd.f32 %v766_v8, %v737_v7 }
 0x670   :  { %v740_v10 = vpop.f32.mrf.mxu0 }
 0x671   :  { %v811_v9 = vpop.f32.mrf.mxu2 }
 0x672   :  { %v2052_v15 = vadd.f32 %v811_v9, %v767_v13 }
 0x674   :  { %v824_v21 = vadd.f32 %v2052_v15, %v2054_v18 }
 0x675   :  { %v769_v11 = vpop.f32.mrf.mxu1 }
 0x676   :  { %v770_v16 = vadd.f32 %v769_v11, %v740_v10 }
 0x678   :  { %v743_v20 = vpop.f32.mrf.mxu0 }
 0x679   :  { %v814_v12 = vpop.f32.mrf.mxu2 }
 0x67a   :  { %v2056_v19 = vadd.f32 %v814_v12, %v770_v16 }
 0x67c   :  { %v825_v24 = vadd.f32 %v824_v21, %v2056_v19 }
 0x67d   :  { %v772_v17 = vpop.f32.mrf.mxu1 }
 0x67e   :  { %v773_v22 = vadd.f32 %v772_v17, %v743_v20 }
 0x681   :  { %v817_v23 = vpop.f32.mrf.mxu2 }
 0x682   :  { %v2061_v25 = vadd.f32 %v817_v23, %v773_v22 }
 0x684   :  { %v826_v26 = vadd.f32 %v825_v24, %v2061_v25 }
 0x686   :  { %v827_v27 = vrot.slane %v826_v26, 4 }
 0x688   :  { %v828_v28 = vadd.f32 %v827_v27, %v826_v26 }
 0x68a   :  { %v829_v33 = vrot.slane %v828_v28, 2 }
 0x68c   :  { %v830_v34 = vadd.f32 %v829_v33, %v828_v28 }
 0x68e   :  { %v831_v35 = vrot.slane %v830_v34, 1 }
 0x690   :  { %v832_v37 = vadd.f32 %v831_v35, %v830_v34 }
 0x692   :  { %834 = vrot.lane.b32.xlu2 %v832_v37, %s1795_s6 }
 0x6ec   :  { %v835_v36 = vpop.permute.xlu2 %834 }
 0x6ed   :  { %v837_v38 = vadd.f32 %v835_v36, %v832_v37 }
 0x6ef   :  { %839 = vrot.lane.b32.xlu0 %v837_v38, %s1796_s9 }
 0x761   :  { %v840_v40 = vpop.permute.xlu0 %839 }
 0x762   :  { %v842_v39 = vadd.f32 %v840_v40, %v837_v38 }
 0x764   :  { %844 = vrot.lane.b32.xlu1 %v842_v39, %s1797_s29 }
 0x7d6   :  { %v845_v41 = vpop.permute.xlu1 %844 }
 0x7d7   :  { %v847_v30 = vadd.f32 %v845_v41, %v842_v39 }
 0x7d9   :  { %849 = vrot.lane.b32.xlu2 %v847_v30, %s1798_s19 }
 0x833   :  { %v850_v42 = vpop.permute.xlu2 %849 }
 0x834   :  { %v852_v31 = vadd.f32 %v850_v42, %v847_v30 }
 0x836   :  { %v853_v32 = vmul.f32 0.001953125, %v852_v31 }
 0x838   :  { %861 = vrot.lane.b32.xlu2 %v853_v32, %s1799_s20  ;;  %858 = vrot.lane.b32.xlu1 %v853_v32, %s1802_s24 }
 0x839   :  { %855 = vrot.lane.b32.xlu0 %v853_v32, %s1786_s30 }
 0x840   :  { %870 = vrot.lane.b32.xlu2 %v853_v32, %s1801_s22  ;;  %867 = vrot.lane.b32.xlu1 %v853_v32, %s1805_s0 }
 0x841   :  { %864 = vrot.lane.b32.xlu0 %v853_v32, %s1791_s8 }
 0x848   :  { %879 = vrot.lane.b32.xlu2 %v853_v32, %s1804_s26  ;;  %876 = vrot.lane.b32.xlu1 %v853_v32, %s1795_s6 }
 0x849   :  { %873 = vrot.lane.b32.xlu0 %v853_v32, %s1800_s21 }
 0x850   :  { %888 = vrot.lane.b32.xlu2 %v853_v32, %s1796_s9  ;;  %885 = vrot.lane.b32.xlu1 %v853_v32, %s1807_s28 }
 0x851   :  { %882 = vrot.lane.b32.xlu0 %v853_v32, %s1803_s25 }
 0x858   :  { %897 = vrot.lane.b32.xlu2 %v853_v32, %s1798_s19  ;;  %894 = vrot.lane.b32.xlu1 %v853_v32, %s1797_s29 }
 0x859   :  { %891 = vrot.lane.b32.xlu0 %v853_v32, %s1806_s27 }
 0x892   :  { %v862_v29 = vpop.permute.xlu2 %861 }
 0x89a   :  { %v871_v45 = vpop.permute.xlu2 %870 }
 0x8a2   :  { %v880_v52 = vpop.permute.xlu2 %879 }
 0x8aa   :  { %v859_v43 = vpop.permute.xlu1 %858  ;;  %v889_v60 = vpop.permute.xlu2 %888 }
 0x8ab   :  { %v856_v44 = vpop.permute.xlu0 %855 }
 0x8ac   :  { %v900_v46 = vsel %vm421_vm0, %v853_v32, %v856_v44  ;;  %v954_v32 = vld [vmem:[%s2389_s7] sm:$0x1] }
 0x8ad   :  { %v901_v48 = vsel %vm423_vm1, %v900_v46, %v859_v43  ;;  %v1106_v46 = vld [vmem:[#allocation13 + $0x1e0] sm:$0xff] }
 0x8ae   :  { %v902_v50 = vsel %vm425_vm2, %v901_v48, %v862_v29  ;;  %v1108_v48 = vld [vmem:[#allocation13 + $0x1f0] sm:$0xff]  ;;  %1110 = vmatpush.msrb.mxu3 %v1106_v46 }
 0x8af   :  { %1168 = vmatpush.msra.mxu1 %v1108_v48  ;;  %v1056_v46 = vld [vmem:[#allocation13 + $0x50] sm:$0xff]  ;;  %v1057_v48 = vld [vmem:[#allocation13 + $0x58] sm:$0xff] }
 0x8b2   :  { %v868_v47 = vpop.permute.xlu1 %867  ;;  %v898_v5 = vpop.permute.xlu2 %897 }
 0x8b3   :  { %v865_v49 = vpop.permute.xlu0 %864 }
 0x8b4   :  { %v903_v51 = vsel %vm427_vm3, %v902_v50, %v865_v49  ;;  %v1109_v49 = vld [vmem:[#allocation13 + $0x1f8] sm:$0xff]  ;;  %v1102_v50 = vld [vmem:[#allocation13 + $0x1c0] sm:$0xff] }
 0x8b5   :  { %v904_v53 = vsel %vm429_vm4, %v903_v51, %v868_v47  ;;  %v2143_v47 = vld [vmem:[#allocation13 + $0x1e8] sm:$0xff]  ;;  %1197 = vmatpush.msra.mxu2 %v1109_v49  ;;  %1111 = vmatpush.msrb.mxu3 %v1102_v50  ;;  %v1050_v49 = vld [vmem:[#allocation13 + $0x20] sm:$0xff] }
 0x8b6   :  { %v905_v56 = vsel %vm431_vm5, %v904_v53, %v871_v45  ;;  %1139 = vmatpush.msra.mxu0 %v2143_v47  ;;  %v2146_v51 = vld [vmem:[#allocation13 + $0x1c8] sm:$0xff]  ;;  %v1105_v53 = vld [vmem:[#allocation13 + $0x1d8] sm:$0xff] }
 0x8b7   :  { %1198 = vmatpush.msra.mxu2 %v1105_v53  ;;  %v1052_v53 = vld [vmem:[#allocation13 + $0x30] sm:$0xff] }
 0x8b8   :  { %1140 = vmatpush.msra.mxu0 %v2146_v51 }
 0x8ba   :  { %v877_v54 = vpop.permute.xlu1 %876 }
 0x8bb   :  { %v874_v55 = vpop.permute.xlu0 %873 }
 0x8bc   :  { %v906_v57 = vsel %vm433_vm6, %v905_v56, %v874_v55  ;;  %v2149_v55 = vld [vmem:[#allocation13 + $0x1a8] sm:$0xff]  ;;  %v1100_v56 = vld [vmem:[#allocation13 + $0x1b0] sm:$0xff] }
 0x8bd   :  { %v907_v58 = vsel %vm435_vm7, %v906_v57, %v877_v54  ;;  %v1098_v54 = vld [vmem:[#allocation13 + $0x1a0] sm:$0xff]  ;;  %v1101_v57 = vld [vmem:[#allocation13 + $0x1b8] sm:$0xff]  ;;  %1141 = vmatpush.msra.mxu0 %v2149_v55 }
 0x8be   :  { %v908_v62 = vsel %vm437_vm8, %v907_v58, %v880_v52  ;;  %v1104_v52 = vld [vmem:[#allocation13 + $0x1d0] sm:$0xff]  ;;  %1112 = vmatpush.msrb.mxu3 %v1098_v54  ;;  %1199 = vmatpush.msra.mxu2 %v1101_v57  ;;  %v1094_v58 = vld [vmem:[#allocation13 + $0x180] sm:$0xff]  ;;  %v1053_v54 = vld [vmem:[#allocation13 + $0x38] sm:$0xff] }
 0x8bf   :  { %1169 = vmatpush.msra.mxu1 %v1104_v52  ;;  %v1051_v52 = vld [vmem:[#allocation13 + $0x28] sm:$0xff]  ;;  %v1046_v57 = vld [vmem:[#allocation13] sm:$0xff] }
 0x8c0   :  { %1113 = vmatpush.msrb.mxu3 %v1094_v58  ;;  %v1047_v58 = vld [vmem:[#allocation13 + $0x8] sm:$0xff] }
 0x8c1   :  { %1170 = vmatpush.msra.mxu1 %v1100_v56 }
 0x8c2   :  { %v886_v59 = vpop.permute.xlu1 %885 }
 0x8c3   :  { %v883_v61 = vpop.permute.xlu0 %882 }
 0x8c4   :  { %v909_v63 = vsel %vm439_vm9, %v908_v62, %v883_v61  ;;  %v1097_v61 = vld [vmem:[#allocation13 + $0x198] sm:$0xff]  ;;  %v1090_v62 = vld [vmem:[#allocation13 + $0x160] sm:$0xff] }
 0x8c5   :  { %v910_v0 = vsel %vm441_vm10, %v909_v63, %v886_v59  ;;  %v2152_v59 = vld [vmem:[#allocation13 + $0x188] sm:$0xff]  ;;  %1200 = vmatpush.msra.mxu2 %v1097_v61  ;;  %1114 = vmatpush.msrb.mxu3 %v1090_v62  ;;  %v1049_v61 = vld [vmem:[#allocation13 + $0x18] sm:$0xff] }
 0x8c6   :  { %v911_v2 = vsel %vm443_vm11, %v910_v0, %v889_v60  ;;  %v1096_v60 = vld [vmem:[#allocation13 + $0x190] sm:$0xff]  ;;  %1142 = vmatpush.msra.mxu0 %v2152_v59  ;;  %v2155_v63 = vld [vmem:[#allocation13 + $0x168] sm:$0xff] }
 0x8c7   :  { %1171 = vmatpush.msra.mxu1 %v1096_v60  ;;  %v1092_v0 = vld [vmem:[#allocation13 + $0x170] sm:$0xff] }
 0x8c8   :  { %1143 = vmatpush.msra.mxu0 %v2155_v63  ;;  %v1048_v60 = vld [vmem:[#allocation13 + $0x10] sm:$0xff] }
 0x8c9   :  { %1172 = vmatpush.msra.mxu1 %v1092_v0 }
 0x8ca   :  { %v895_v1 = vpop.permute.xlu1 %894 }
 0x8cb   :  { %v892_v3 = vpop.permute.xlu0 %891 }
 0x8cc   :  { %v912_v4 = vsel %vm2400_vm13, %v911_v2, %v892_v3  ;;  %v1086_v2 = vld [vmem:[#allocation13 + $0x140] sm:$0xff]  ;;  %v2158_v3 = vld [vmem:[#allocation13 + $0x148] sm:$0xff] }
 0x8cd   :  { %v913_v6 = vsel %vm2401_vm14, %v912_v4, %v895_v1  ;;  %v1093_v1 = vld [vmem:[#allocation13 + $0x178] sm:$0xff]  ;;  %v1088_v4 = vld [vmem:[#allocation13 + $0x150] sm:$0xff]  ;;  %1115 = vmatpush.msrb.mxu3 %v1086_v2  ;;  %1144 = vmatpush.msra.mxu0 %v2158_v3 }
 0x8ce   :  { %v914_v7 = vsel %vm2402_vm15, %v913_v6, %v898_v5  ;;  %v1089_v5 = vld [vmem:[#allocation13 + $0x158] sm:$0xff]  ;;  %1201 = vmatpush.msra.mxu2 %v1093_v1  ;;  %v1082_v6 = vld [vmem:[#allocation13 + $0x120] sm:$0xff]  ;;  %1173 = vmatpush.msra.mxu1 %v1088_v4 }
 0x8cf   :  { %v915_v8 = vperm.slane %v914_v7, 0  ;;  %v2161_v7 = vld [vmem:[#allocation13 + $0x128] sm:$0xff]  ;;  %1116 = vmatpush.msrb.mxu3 %v1082_v6 }
 0x8d0   :  { %1202 = vmatpush.msra.mxu2 %v1089_v5  ;;  %1145 = vmatpush.msra.mxu0 %v2161_v7 }
 0x8d1   :  { %v2099_v9 = vsub.f32 %v2054_v18, %v915_v8  ;;  %v2102_v10 = vsub.f32 %v2052_v15, %v915_v8  ;;  %v2105_v11 = vsub.f32 %v2056_v19, %v915_v8  ;;  %v2108_v12 = vsub.f32 %v2061_v25, %v915_v8  ;;  %v1084_v8 = vld [vmem:[#allocation13 + $0x130] sm:$0xff] }
 0x8d2   :  { %1174 = vmatpush.msra.mxu1 %v1084_v8 }
 0x8d3   :  { %v920_v13 = vmul.f32 %v2099_v9, %v2099_v9  ;;  %v921_v14 = vmul.f32 %v2102_v10, %v2102_v10  ;;  %v922_v16 = vmul.f32 %v2105_v11, %v2105_v11  ;;  %v923_v15 = vmul.f32 %v2108_v12, %v2108_v12 }
 0x8d5   :  { %v924_v17 = vadd.f32 %v921_v14, %v920_v13  ;;  %v1085_v13 = vld [vmem:[#allocation13 + $0x138] sm:$0xff] }
 0x8d6   :  { %1203 = vmatpush.msra.mxu2 %v1085_v13 }
 0x8d7   :  { %v925_v18 = vadd.f32 %v924_v17, %v922_v16  ;;  %v1078_v16 = vld [vmem:[#allocation13 + $0x100] sm:$0xff]  ;;  %v2166_v17 = vld [vmem:[#allocation13 + $0x108] sm:$0xff] }
 0x8d8   :  { %1117 = vmatpush.msrb.mxu3 %v1078_v16  ;;  %1146 = vmatpush.msra.mxu0 %v2166_v17 }
 0x8d9   :  { %v926_v20 = vadd.f32 %v925_v18, %v923_v15  ;;  %v1080_v15 = vld [vmem:[#allocation13 + $0x110] sm:$0xff]  ;;  %v1081_v18 = vld [vmem:[#allocation13 + $0x118] sm:$0xff] }
 0x8da   :  { %1175 = vmatpush.msra.mxu1 %v1080_v15  ;;  %1204 = vmatpush.msra.mxu2 %v1081_v18 }
 0x8db   :  { %v927_v19 = vrot.slane %v926_v20, 4 }
 0x8dd   :  { %v928_v21 = vadd.f32 %v927_v19, %v926_v20  ;;  %v1074_v20 = vld [vmem:[#allocation13 + $0xe0] sm:$0xff]  ;;  %v2169_v19 = vld [vmem:[#allocation13 + $0xe8] sm:$0xff] }
 0x8de   :  { %1118 = vmatpush.msrb.mxu3 %v1074_v20  ;;  %1147 = vmatpush.msra.mxu0 %v2169_v19 }
 0x8df   :  { %v929_v22 = vrot.slane %v928_v21, 2 }
 0x8e1   :  { %v930_v23 = vadd.f32 %v929_v22, %v928_v21  ;;  %v1076_v21 = vld [vmem:[#allocation13 + $0xf0] sm:$0xff]  ;;  %v1077_v22 = vld [vmem:[#allocation13 + $0xf8] sm:$0xff] }
 0x8e2   :  { %1176 = vmatpush.msra.mxu1 %v1076_v21  ;;  %1205 = vmatpush.msra.mxu2 %v1077_v22  ;;  %v1559_v22 = vld [vmem:[#allocation11] ss:$0 sm:$0xff] }
 0x8e3   :  { %v931_v24 = vrot.slane %v930_v23, 1 }
 0x8e5   :  { %v932_v25 = vadd.f32 %v931_v24, %v930_v23  ;;  %v1070_v23 = vld [vmem:[#allocation13 + $0xc0] sm:$0xff]  ;;  %v2172_v24 = vld [vmem:[#allocation13 + $0xc8] sm:$0xff] }
 0x8e6   :  { %1119 = vmatpush.msrb.mxu3 %v1070_v23  ;;  %1148 = vmatpush.msra.mxu0 %v2172_v24 }
 0x8e7   :  { %934 = vrot.lane.b32.xlu0 %v932_v25, %s1795_s6 }
 0x959   :  { %v935_v26 = vpop.permute.xlu0 %934 }
 0x95a   :  { %v937_v27 = vadd.f32 %v935_v26, %v932_v25  ;;  %v1072_v25 = vld [vmem:[#allocation13 + $0xd0] sm:$0xff]  ;;  %v1073_v26 = vld [vmem:[#allocation13 + $0xd8] sm:$0xff] }
 0x95b   :  { %1177 = vmatpush.msra.mxu1 %v1072_v25  ;;  %1206 = vmatpush.msra.mxu2 %v1073_v26 }
 0x95c   :  { %939 = vrot.lane.b32.xlu1 %v937_v27, %s1796_s9 }
 0x9ce   :  { %v940_v28 = vpop.permute.xlu1 %939 }
 0x9cf   :  { %v942_v33 = vadd.f32 %v940_v28, %v937_v27  ;;  %v1066_v27 = vld [vmem:[#allocation13 + $0xa0] sm:$0xff] }
 0x9d0   :  { %1120 = vmatpush.msrb.mxu3 %v1066_v27 }
 0x9d1   :  { %944 = vrot.lane.b32.xlu2 %v942_v33, %s1797_s29 }
 0xa2b   :  { %v945_v34 = vpop.permute.xlu2 %944 }
 0xa2c   :  { %v947_v35 = vadd.f32 %v945_v34, %v942_v33  ;;  %v2175_v34 = vld [vmem:[#allocation13 + $0xa8] sm:$0xff] }
 0xa2d   :  { %1149 = vmatpush.msra.mxu0 %v2175_v34 }
 0xa2e   :  { %949 = vrot.lane.b32.xlu0 %v947_v35, %s1798_s19 }
 0xaa0   :  { %v950_v37 = vpop.permute.xlu0 %949 }
 0xaa1   :  { %v952_v36 = vadd.f32 %v950_v37, %v947_v35  ;;  %v1068_v35 = vld [vmem:[#allocation13 + $0xb0] sm:$0xff]  ;;  %v1069_v37 = vld [vmem:[#allocation13 + $0xb8] sm:$0xff] }
 0xaa2   :  { %1178 = vmatpush.msra.mxu1 %v1068_v35  ;;  %1207 = vmatpush.msra.mxu2 %v1069_v37 }
 0xaa3   :  { %v953_v38 = vmul.f32 0.001953125, %v952_v36  ;;  %v1062_v36 = vld [vmem:[#allocation13 + $0x80] sm:$0xff] }
 0xaa4   :  { %1121 = vmatpush.msrb.mxu3 %v1062_v36 }
 0xaa5   :  { %v955_v40 = vadd.f32 1e-05, %v953_v38  ;;  %v2178_v38 = vld [vmem:[#allocation13 + $0x88] sm:$0xff] }
 0xaa6   :  { %1150 = vmatpush.msra.mxu0 %v2178_v38 }
 0xaa7   :  { %1562 = vrsqrt.f32 %v955_v40  ;;  %vm962_vm13 = vweird.f32 %v955_v40 }
 0xaad   :  { %v1563_v39 = vpop.eup %1562 }
 0xaae   :  { %v957_v41 = vmul.f32 %v1563_v39, %v955_v40  ;;  %vm963_vm12 = vweird.f32 %v1563_v39  ;;  %v1064_v40 = vld [vmem:[#allocation13 + $0x90] sm:$0xff] }
 0xaaf   :  { %vm964_vm14 = vmor %vm962_vm13, %vm963_vm12  ;;  %1179 = vmatpush.msra.mxu1 %v1064_v40 }
 0xab0   :  { %v958_v30 = vmul.f32 %v1563_v39, %v957_v41  ;;  %v1065_v41 = vld [vmem:[#allocation13 + $0x98] sm:$0xff] }
 0xab1   :  { %1208 = vmatpush.msra.mxu2 %v1065_v41 }
 0xab2   :  { %v959_v42 = vmul.f32 0.5, %v958_v30  ;;  %v1058_v30 = vld [vmem:[#allocation13 + $0x60] sm:$0xff] }
 0xab3   :  { %1122 = vmatpush.msrb.mxu3 %v1058_v30 }
 0xab4   :  { %v960_v31 = vsub.f32 1.5, %v959_v42  ;;  %v2181_v42 = vld [vmem:[#allocation13 + $0x68] sm:$0xff] }
 0xab5   :  { %1151 = vmatpush.msra.mxu0 %v2181_v42 }
 0xab6   :  { %v961_v29 = vmul.f32 %v1563_v39, %v960_v31  ;;  %v1060_v31 = vld [vmem:[#allocation13 + $0x70] sm:$0xff] }
 0xab7   :  { %1180 = vmatpush.msra.mxu1 %v1060_v31 }
 0xab8   :  { %v965_v43 = vsel %vm964_vm14, %v1563_v39, %v961_v29  ;;  %v1061_v29 = vld [vmem:[#allocation13 + $0x78] sm:$0xff] }
 0xab9   :  { %v2125_v44 = vmul.f32 %v965_v43, %v954_v32  ;;  %v1054_v43 = vld [vmem:[#allocation13 + $0x40] sm:$0xff]  ;;  %1209 = vmatpush.msra.mxu2 %v1061_v29  ;;  %1181 = vmatpush.msra.mxu1 %v1056_v46 }
 0xaba   :  { %1123 = vmatpush.msrb.mxu3 %v1054_v43 }
 0xabb   :  { %v968_v45 = vperm.slane %v2125_v44, 0  ;;  %1210 = vmatpush.msra.mxu2 %v1057_v48  ;;  %1182 = vmatpush.msra.mxu1 %v1052_v53 }
 0xabc   :  { %1124 = vmatpush.msrb.mxu3 %v1050_v49 }
 0xabd   :  { %975 = vrot.lane.b32.xlu0 %v968_v45, %s1799_s20  ;;  %972 = vrot.lane.b32.xlu2 %v968_v45, %s1802_s24 }
 0xabe   :  { %969 = vrot.lane.b32.xlu1 %v968_v45, %s1786_s30  ;;  %1211 = vmatpush.msra.mxu2 %v1053_v54 }
 0xabf   :  { %1125 = vmatpush.msrb.mxu3 %v1046_v57  ;;  %1183 = vmatpush.msra.mxu1 %v1048_v60 }
 0xac0   :  { %1212 = vmatpush.msra.mxu2 %v1049_v61 }
 0xac1   :  { %1516 = vmatpush.msra.mxu3 %v2143_v47 }
 0xac3   :  { %1517 = vmatpush.msra.mxu3 %v2146_v51 }
 0xac5   :  { %984 = vrot.lane.b32.xlu0 %v968_v45, %s1801_s22  ;;  %981 = vrot.lane.b32.xlu2 %v968_v45, %s1805_s0 }
 0xac6   :  { %978 = vrot.lane.b32.xlu1 %v968_v45, %s1791_s8  ;;  %1518 = vmatpush.msra.mxu3 %v2149_v55 }
 0xac8   :  { %1519 = vmatpush.msra.mxu3 %v2152_v59 }
 0xaca   :  { %1520 = vmatpush.msra.mxu3 %v2155_v63 }
 0xacc   :  { %1521 = vmatpush.msra.mxu3 %v2158_v3 }
 0xacd   :  { %993 = vrot.lane.b32.xlu0 %v968_v45, %s1804_s26  ;;  %990 = vrot.lane.b32.xlu2 %v968_v45, %s1795_s6 }
 0xace   :  { %987 = vrot.lane.b32.xlu1 %v968_v45, %s1800_s21  ;;  %1522 = vmatpush.msra.mxu3 %v2161_v7 }
 0xad0   :  { %1523 = vmatpush.msra.mxu3 %v2166_v17 }
 0xad2   :  { %1524 = vmatpush.msra.mxu3 %v2169_v19 }
 0xad4   :  { %1525 = vmatpush.msra.mxu3 %v2172_v24 }
 0xad5   :  { %1002 = vrot.lane.b32.xlu0 %v968_v45, %s1796_s9  ;;  %999 = vrot.lane.b32.xlu2 %v968_v45, %s1807_s28 }
 0xad6   :  { %996 = vrot.lane.b32.xlu1 %v968_v45, %s1803_s25  ;;  %1526 = vmatpush.msra.mxu3 %v2175_v34 }
 0xad8   :  { %1527 = vmatpush.msra.mxu3 %v2178_v38 }
 0xada   :  { %1528 = vmatpush.msra.mxu3 %v2181_v42 }
 0xadd   :  { %1011 = vrot.lane.b32.xlu0 %v968_v45, %s1798_s19  ;;  %1008 = vrot.lane.b32.xlu2 %v968_v45, %s1797_s29 }
 0xade   :  { %1005 = vrot.lane.b32.xlu1 %v968_v45, %s1806_s27  ;;  %v2186_v45 = vld [vmem:[#allocation13 + $0x48] sm:$0xff] }
 0xadf   :  { %1152 = vmatpush.msra.mxu0 %v2186_v45  ;;  %1529 = vmatpush.msra.mxu3 %v2186_v45 }
 0xae1   :  { %1153 = vmatpush.msra.mxu0 %v1051_v52  ;;  %1530 = vmatpush.msra.mxu3 %v1051_v52 }
 0xae3   :  { %1154 = vmatpush.msra.mxu0 %v1047_v58  ;;  %1531 = vmatpush.msra.mxu3 %v1047_v58 }
 0xb17   :  { %v2163_v14 = vpop.permute.xlu2 %972 }
 0xb1f   :  { %v982_v39 = vpop.permute.xlu2 %981 }
 0xb27   :  { %v991_v1 = vpop.permute.xlu2 %990 }
 0xb2f   :  { %v976_v28 = vpop.permute.xlu0 %975 }
 0xb30   :  { %v970_v33 = vpop.permute.xlu1 %969 }
 0xb31   :  { %v1014_v32 = vsel %vm421_vm0, %v2125_v44, %v970_v33  ;;  %vm2403_vm0 = vcmask 850944  }
 0xb32   :  { %v1015_v44 = vsel %vm423_vm1, %v1014_v32, %v2163_v14  ;;  %v1000_v14 = vpop.permute.xlu2 %999  ;;  %vm2404_vm1 = vcmask 916480  }
 0xb33   :  { %v1016_v62 = vsel %vm425_vm2, %v1015_v44, %v976_v28  ;;  %vm2405_vm2 = vmmov %vm2402_vm15 }
 0xb37   :  { %v985_v50 = vpop.permute.xlu0 %984 }
 0xb38   :  { %v979_v56 = vpop.permute.xlu1 %978 }
 0xb39   :  { %v1017_v0 = vsel %vm427_vm3, %v1016_v62, %v979_v56 }
 0xb3a   :  { %v1018_v2 = vsel %vm429_vm4, %v1017_v0, %v982_v39  ;;  %v1009_v3 = vpop.permute.xlu2 %1008 }
 0xb3b   :  { %v1019_v6 = vsel %vm431_vm5, %v1018_v2, %v985_v50 }
 0xb3f   :  { %v994_v4 = vpop.permute.xlu0 %993 }
 0xb40   :  { %v988_v5 = vpop.permute.xlu1 %987 }
 0xb41   :  { %v1020_v8 = vsel %vm433_vm6, %v1019_v6, %v988_v5 }
 0xb42   :  { %v1021_v13 = vsel %vm435_vm7, %v1020_v8, %v991_v1 }
 0xb43   :  { %v1022_v51 = vsel %vm437_vm8, %v1021_v13, %v994_v4 }
 0xb47   :  { %v1003_v47 = vpop.permute.xlu0 %1002 }
 0xb48   :  { %v997_v16 = vpop.permute.xlu1 %996 }
 0xb49   :  { %v1023_v55 = vsel %vm439_vm9, %v1022_v51, %v997_v16 }
 0xb4a   :  { %v1024_v15 = vsel %vm441_vm10, %v1023_v55, %v1000_v14 }
 0xb4b   :  { %v1025_v59 = vsel %vm443_vm11, %v1024_v15, %v1003_v47 }
 0xb4f   :  { %v1012_v20 = vpop.permute.xlu0 %1011 }
 0xb50   :  { %v1006_v63 = vpop.permute.xlu1 %1005 }
 0xb51   :  { %v1026_v18 = vsel %vm2403_vm0, %v1025_v59, %v1006_v63 }
 0xb52   :  { %v1027_v7 = vsel %vm2404_vm1, %v1026_v18, %v1009_v3 }
 0xb53   :  { %v1028_v21 = vsel %vm2405_vm2, %v1027_v7, %v1012_v20 }
 0xb54   :  { %v1029_v17 = vperm.slane %v1028_v21, 0 }
 0xb56   :  { %v1030_v19 = vmul.f32 %v1029_v17, %v2099_v9  ;;  %v1031_v25 = vmul.f32 %v1029_v17, %v2102_v10  ;;  %v1032_v28 = vmul.f32 %v1029_v17, %v2105_v11  ;;  %v1033_v34 = vmul.f32 %v1029_v17, %v2108_v12 }
 0xb58   :  { %v1038_v23 = vadd.f32 %v1559_v22, %v1030_v19  ;;  %v1039_v26 = vadd.f32 %v1559_v22, %v1031_v25  ;;  %v1040_v9 = vadd.f32 %v1559_v22, %v1032_v28  ;;  %v1041_v10 = vadd.f32 %v1559_v22, %v1033_v34 }
 0xb5a   :  { %v1042_v24 = vmax.f32 %v1038_v23, 0.0  ;;  %v1043_v27 = vmax.f32 %v1039_v26, 0.0  ;;  %v1044_v33 = vmax.f32 %v1040_v9, 0.0  ;;  %v1045_v35 = vmax.f32 %v1041_v10, 0.0 }
 0xb5c   :  { %1126 = vmatmul.f32.vlgmr.msrb.gmra.mxu3 %v1042_v24  ;;  %1155 = vmatmul.f32.vlgmr.msra.gmra.mxu0 %v1042_v24 }
 0xb5d   :  { %1184 = vmatmul.f32.vlgmr.msra.gmra.mxu1 %v1042_v24  ;;  %1213 = vmatmul.f32.vlgmr.msra.gmra.mxu2 %v1042_v24 }
 0xb64   :  { %1129 = vmatmul.f32.gmra.mxu3 %v1043_v27 }
 0xb65   :  { %1187 = vmatmul.f32.gmra.mxu1 %v1043_v27  ;;  %1216 = vmatmul.f32.gmra.mxu2 %v1043_v27 }
 0xb6c   :  { %1132 = vmatmul.f32.gmra.mxu3 %v1044_v33 }
 0xb6d   :  { %1190 = vmatmul.f32.gmra.mxu1 %v1044_v33  ;;  %1219 = vmatmul.f32.gmra.mxu2 %v1044_v33 }
 0xb74   :  { %1135 = vmatmul.f32.gmra.mxu3 %v1045_v35 }
 0xb75   :  { %1193 = vmatmul.f32.gmra.mxu1 %v1045_v35  ;;  %1222 = vmatmul.f32.gmra.mxu2 %v1045_v35 }
 0xb7c   :  { %1158 = vmatmul.f32.vlgmr.msra.gmra.mxu3 %v1043_v27 }
 0xb84   :  { %1161 = vmatmul.f32.gmra.mxu3 %v1044_v33 }
 0xb8c   :  { %1164 = vmatmul.f32.gmra.mxu3 %v1045_v35 }
 0xbd9   :  { %v1156_v61 = vpop.f32.mrf.mxu0 }
 0xbda   :  { %v2224_v11 = vpop.f32.mrf.mxu1 }
 0xbdf   :  { %v2222_v37 = vpop.f32.mrf.mxu3 }
 0xbe0   :  { %v2226_v36 = vpop.f32.mrf.mxu2 }
 0xbe2   :  { %v2230_v12 = vpop.f32.mrf.mxu1 }
 0xbe3   :  { %v1244_v29 = vadd.f32 %v2230_v12, %v2224_v11 }
 0xbe7   :  { %v2228_v38 = vpop.f32.mrf.mxu3 }
 0xbe8   :  { %v2232_v40 = vpop.f32.mrf.mxu2  ;;  %v1226_v31 = vadd.f32 %v2228_v38, %v2222_v37 }
 0xbe9   :  { %v1253_v43 = vadd.f32 %v2232_v40, %v2226_v36 }
 0xbea   :  { %v2236_v41 = vpop.f32.mrf.mxu1 }
 0xbeb   :  { %v1245_v49 = vadd.f32 %v1244_v29, %v2236_v41 }
 0xbef   :  { %v2234_v39 = vpop.f32.mrf.mxu3 }
 0xbf0   :  { %v2238_v30 = vpop.f32.mrf.mxu2  ;;  %v1227_v45 = vadd.f32 %v1226_v31, %v2234_v39 }
 0xbf1   :  { %v1254_v50 = vadd.f32 %v1253_v43, %v2238_v30 }
 0xbf2   :  { %v2251_v46 = vpop.f32.mrf.mxu1 }
 0xbf3   :  { %v1246_v53 = vadd.f32 %v1245_v49, %v2251_v46 }
 0xbf5   :  { %v1247_v57 = vrot.slane %v1246_v53, 4 }
 0xbf7   :  { %v2240_v42 = vpop.f32.mrf.mxu3  ;;  %v1248_v62 = vadd.f32 %v1247_v57, %v1246_v53 }
 0xbf8   :  { %v2253_v48 = vpop.f32.mrf.mxu2  ;;  %v1228_v52 = vadd.f32 %v1227_v45, %v2240_v42 }
 0xbf9   :  { %v1255_v54 = vadd.f32 %v1254_v50, %v2253_v48  ;;  %v1249_v6 = vrot.slane %v1248_v62, 2 }
 0xbfa   :  { %v1229_v44 = vrot.slane %v1228_v52, 4 }
 0xbfb   :  { %v1256_v58 = vrot.slane %v1255_v54, 4  ;;  %v1250_v16 = vadd.f32 %v1249_v6, %v1248_v62 }
 0xbfc   :  { %v1230_v60 = vadd.f32 %v1229_v44, %v1228_v52 }
 0xbfd   :  { %v1257_v0 = vadd.f32 %v1256_v58, %v1255_v54  ;;  %v1251_v63 = vrot.slane %v1250_v16, 1 }
 0xbfe   :  { %v1231_v2 = vrot.slane %v1230_v60, 2 }
 0xbff   :  { %v2244_v32 = vpop.f32.mrf.mxu3  ;;  %v1258_v8 = vrot.slane %v1257_v0, 2  ;;  %v1252_v21 = vadd.f32 %v1251_v63, %v1250_v16 }
 0xc00   :  { %v1235_v1 = vadd.f32 %v2244_v32, %v1156_v61  ;;  %v1232_v14 = vadd.f32 %v1231_v2, %v1230_v60 }
 0xc01   :  { %v1259_v51 = vadd.f32 %v1258_v8, %v1257_v0 }
 0xc02   :  { %v1233_v15 = vrot.slane %v1232_v14, 1 }
 0xc03   :  { %v1260_v3 = vrot.slane %v1259_v51, 1 }
 0xc04   :  { %v1234_v20 = vadd.f32 %v1233_v15, %v1232_v14 }
 0xc05   :  { %v1261_v17 = vadd.f32 %v1260_v3, %v1259_v51 }
 0xc06   :  { %v1262_v19 = vadd.f32 %v1252_v21, %v1234_v20 }
 0xc07   :  { %v1162_v56 = vpop.f32.mrf.mxu3 }
 0xc08   :  { %v1236_v4 = vadd.f32 %v1235_v1, %v1162_v56 }
 0xc0f   :  { %v1165_v5 = vpop.f32.mrf.mxu3 }
 0xc10   :  { %v1237_v13 = vadd.f32 %v1236_v4, %v1165_v5 }
 0xc12   :  { %v1238_v47 = vrot.slane %v1237_v13, 4 }
 0xc14   :  { %v1239_v55 = vadd.f32 %v1238_v47, %v1237_v13 }
 0xc16   :  { %v1240_v59 = vrot.slane %v1239_v55, 2 }
 0xc18   :  { %v1241_v18 = vadd.f32 %v1240_v59, %v1239_v55 }
 0xc1a   :  { %v1242_v7 = vrot.slane %v1241_v18, 1 }
 0xc1c   :  { %v1243_v22 = vadd.f32 %v1242_v7, %v1241_v18 }
 0xc1e   :  { %v1263_v23 = vadd.f32 %v1261_v17, %v1243_v22 }
 0xc20   :  { %v1264_v24 = vadd.f32 %v1263_v23, %v1262_v19 }
 0xc22   :  { %1266 = vrot.lane.b32.xlu1 %v1264_v24, %s1795_s6 }
 0xc94   :  { %v1267_v25 = vpop.permute.xlu1 %1266 }
 0xc95   :  { %v1269_v26 = vadd.f32 %v1267_v25, %v1264_v24 }
 0xc97   :  { %1271 = vrot.lane.b32.xlu2 %v1269_v26, %s1796_s9 }
 0xcf1   :  { %v1272_v27 = vpop.permute.xlu2 %1271 }
 0xcf2   :  { %v1274_v28 = vadd.f32 %v1272_v27, %v1269_v26 }
 0xcf4   :  { %v1275_v9 = vmul.f32 0.001953125, %v1274_v28 }
 0xcf6   :  { %1283 = vrot.lane.b32.xlu2 %v1275_v9, %s1796_s9  ;;  %1280 = vrot.lane.b32.xlu1 %v1275_v9, %s1795_s6 }
 0xcf7   :  { %1277 = vrot.lane.b32.xlu0 %v1275_v9, %s1791_s8 }
 0xd50   :  { %v1284_v35 = vpop.permute.xlu2 %1283 }
 0xd68   :  { %v1281_v33 = vpop.permute.xlu1 %1280 }
 0xd69   :  { %v1278_v34 = vpop.permute.xlu0 %1277 }
 0xd6a   :  { %v1286_v10 = vsel %vm427_vm3, %v1275_v9, %v1278_v34 }
 0xd6b   :  { %v1287_v31 = vsel %vm435_vm7, %v1286_v10, %v1281_v33 }
 0xd6c   :  { %v1288_v29 = vsel %vm443_vm11, %v1287_v31, %v1284_v35 }
 0xd6d   :  { %v1289_v43 = vperm.slane %v1288_v29, 0 }
 0xd6f   :  { %v2270_v45 = vsub.f32 %v2222_v37, %v1289_v43  ;;  %v2272_v49 = vsub.f32 %v1156_v61, %v1289_v43  ;;  %v2275_v50 = vsub.f32 %v2224_v11, %v1289_v43  ;;  %v2278_v52 = vsub.f32 %v2226_v36, %v1289_v43 }
 0xd70   :  { %v2281_v53 = vsub.f32 %v2228_v38, %v1289_v43  ;;  %v2284_v54 = vsub.f32 %v2244_v32, %v1289_v43  ;;  %v2287_v44 = vsub.f32 %v2230_v12, %v1289_v43  ;;  %v2290_v37 = vsub.f32 %v2232_v40, %v1289_v43 }
 0xd71   :  { %v2293_v57 = vsub.f32 %v2234_v39, %v1289_v43  ;;  %v2295_v11 = vsub.f32 %v1162_v56, %v1289_v43  ;;  %v2298_v36 = vsub.f32 %v2236_v41, %v1289_v43  ;;  %v2301_v38 = vsub.f32 %v2238_v30, %v1289_v43 }
 0xd72   :  { %v2304_v32 = vsub.f32 %v2240_v42, %v1289_v43  ;;  %v2306_v58 = vsub.f32 %v1165_v5, %v1289_v43  ;;  %v2309_v12 = vsub.f32 %v2251_v46, %v1289_v43  ;;  %v2312_v40 = vsub.f32 %v2253_v48, %v1289_v43 }
 0xd73   :  { %v1306_v39 = vmul.f32 %v2270_v45, %v2270_v45  ;;  %v1307_v41 = vmul.f32 %v2272_v49, %v2272_v49  ;;  %v1308_v30 = vmul.f32 %v2275_v50, %v2275_v50  ;;  %v1309_v42 = vmul.f32 %v2278_v52, %v2278_v52 }
 0xd74   :  { %v1310_v56 = vmul.f32 %v2281_v53, %v2281_v53  ;;  %v1311_v46 = vmul.f32 %v2284_v54, %v2284_v54  ;;  %v1312_v48 = vmul.f32 %v2287_v44, %v2287_v44  ;;  %v1313_v60 = vmul.f32 %v2290_v37, %v2290_v37 }
 0xd75   :  { %v1314_v61 = vmul.f32 %v2293_v57, %v2293_v57  ;;  %v1315_v62 = vmul.f32 %v2295_v11, %v2295_v11  ;;  %v1316_v0 = vmul.f32 %v2298_v36, %v2298_v36  ;;  %v1317_v1 = vmul.f32 %v2301_v38, %v2301_v38 }
 0xd76   :  { %v1322_v2 = vadd.f32 %v1310_v56, %v1306_v39  ;;  %v1331_v4 = vadd.f32 %v1311_v46, %v1307_v41  ;;  %v1340_v5 = vadd.f32 %v1312_v48, %v1308_v30  ;;  %v1349_v6 = vadd.f32 %v1313_v60, %v1309_v42 }
 0xd77   :  { %v1318_v8 = vmul.f32 %v2304_v32, %v2304_v32  ;;  %v1319_v13 = vmul.f32 %v2306_v58, %v2306_v58  ;;  %v1320_v14 = vmul.f32 %v2309_v12, %v2309_v12  ;;  %v1321_v47 = vmul.f32 %v2312_v40, %v2312_v40 }
 0xd78   :  { %v1323_v16 = vadd.f32 %v1322_v2, %v1314_v61  ;;  %v1332_v51 = vadd.f32 %v1331_v4, %v1315_v62  ;;  %v1341_v55 = vadd.f32 %v1340_v5, %v1316_v0  ;;  %v1350_v15 = vadd.f32 %v1349_v6, %v1317_v1 }
 0xd7a   :  { %v1324_v59 = vadd.f32 %v1323_v16, %v1318_v8  ;;  %v1333_v63 = vadd.f32 %v1332_v51, %v1319_v13  ;;  %v1342_v3 = vadd.f32 %v1341_v55, %v1320_v14  ;;  %v1351_v18 = vadd.f32 %v1350_v15, %v1321_v47  ;;  %v1372_v47 = vld [vmem:[%s2392_s10] sm:$0x1]  ;;  %s1809_s10 = smov [#allocation14]  }
 0xd7c   :  { %v1325_v20 = vrot.slane %v1324_v59, 4  ;;  %v1334_v7 = vrot.slane %v1333_v63, 4  ;;  %v1343_v21 = vrot.slane %v1342_v3, 4  ;;  %v1352_v17 = vrot.slane %v1351_v18, 4 }
 0xd7e   :  { %v1326_v22 = vadd.f32 %v1325_v20, %v1324_v59  ;;  %v1335_v19 = vadd.f32 %v1334_v7, %v1333_v63  ;;  %v1344_v23 = vadd.f32 %v1343_v21, %v1342_v3  ;;  %v1353_v24 = vadd.f32 %v1352_v17, %v1351_v18  ;;  %v1416_v20 = vld [vmem:[%s2393_s11] sm:$0xf]  ;;  %s1494_s11 = sshll.u32 %s1809_s10, 4  ;;  %s1495_s11 = int_to_ptr.vmem [resolvable:$true] %s1494_s11 }
 0xd7f   :  { %v1418_v17 = vperm.slane %v1416_v20, 0 }
 0xd80   :  { %v1327_v25 = vrot.slane %v1326_v22, 2  ;;  %v1336_v26 = vrot.slane %v1335_v19, 2  ;;  %v1345_v27 = vrot.slane %v1344_v23, 2  ;;  %v1354_v28 = vrot.slane %v1353_v24, 2 }
 0xd82   :  { %v1328_v9 = vadd.f32 %v1327_v25, %v1326_v22  ;;  %v1337_v33 = vadd.f32 %v1336_v26, %v1335_v19  ;;  %v1346_v34 = vadd.f32 %v1345_v27, %v1344_v23  ;;  %v1355_v10 = vadd.f32 %v1354_v28, %v1353_v24 }
 0xd83   :  { %v1419_v22 = vperm.slane %v1416_v20, 1  ;;  %v1420_v25 = vperm.slane %v1416_v20, 2  ;;  %v1421_v27 = vperm.slane %v1416_v20, 3 }
 0xd84   :  { %v1329_v35 = vrot.slane %v1328_v9, 1  ;;  %v1338_v31 = vrot.slane %v1337_v33, 1  ;;  %v1347_v29 = vrot.slane %v1346_v34, 1  ;;  %v1356_v43 = vrot.slane %v1355_v10, 1 }
 0xd86   :  { %v1330_v39 = vadd.f32 %v1329_v35, %v1328_v9  ;;  %v1339_v41 = vadd.f32 %v1338_v31, %v1337_v33  ;;  %v1348_v30 = vadd.f32 %v1347_v29, %v1346_v34  ;;  %v1357_v42 = vadd.f32 %v1356_v43, %v1355_v10 }
 0xd88   :  { %v1358_v56 = vadd.f32 %v1348_v30, %v1330_v39  ;;  %v1359_v46 = vadd.f32 %v1357_v42, %v1339_v41 }
 0xd8a   :  { %v1360_v48 = vadd.f32 %v1359_v46, %v1358_v56 }
 0xd8c   :  { %1362 = vrot.lane.b32.xlu0 %v1360_v48, %s1795_s6 }
 0xdfe   :  { %v1363_v60 = vpop.permute.xlu0 %1362 }
 0xdff   :  { %v1365_v61 = vadd.f32 %v1363_v60, %v1360_v48 }
 0xe01   :  { %1367 = vrot.lane.b32.xlu1 %v1365_v61, %s1796_s9 }
 0xe73   :  { %v1368_v62 = vpop.permute.xlu1 %1367 }
 0xe74   :  { %v1370_v0 = vadd.f32 %v1368_v62, %v1365_v61  ;;  %v1570_v61 = vld [vmem:[#allocation2 + $0x20] sm:$0xff] }
 0xe76   :  { %v1371_v1 = vmul.f32 0.001953125, %v1370_v0 }
 0xe78   :  { %v1373_v2 = vadd.f32 1e-05, %v1371_v1 }
 0xe7a   :  { %1564 = vrsqrt.f32 %v1373_v2  ;;  %vm1380_vm5 = vweird.f32 %v1373_v2 }
 0xe80   :  { %v1565_v4 = vpop.eup %1564 }
 0xe81   :  { %v1375_v5 = vmul.f32 %v1565_v4, %v1373_v2  ;;  %vm1381_vm4 = vweird.f32 %v1565_v4  ;;  %v1571_v2 = vld [vmem:[#allocation2 + $0x28] sm:$0xff] }
 0xe82   :  { %vm1382_vm6 = vmor %vm1380_vm5, %vm1381_vm4 }
 0xe83   :  { %v1376_v6 = vmul.f32 %v1565_v4, %v1375_v5  ;;  %v1572_v5 = vld [vmem:[#allocation2 + $0x30] sm:$0xff] }
 0xe85   :  { %v1377_v8 = vmul.f32 0.5, %v1376_v6 }
 0xe87   :  { %v1378_v13 = vsub.f32 1.5, %v1377_v8 }
 0xe89   :  { %v1379_v14 = vmul.f32 %v1565_v4, %v1378_v13 }
 0xe8b   :  { %v1383_v16 = vsel %vm1382_vm6, %v1565_v4, %v1379_v14 }
 0xe8c   :  { %v1384_v51 = vmul.f32 %v1383_v16, %v1372_v47 }
 0xe8e   :  { %v1386_v55 = vperm.slane %v1384_v51, 0 }
 0xe90   :  { %1393 = vrot.lane.b32.xlu1 %v1386_v55, %s1796_s9  ;;  %1390 = vrot.lane.b32.xlu0 %v1386_v55, %s1795_s6 }
 0xe91   :  { %1387 = vrot.lane.b32.xlu2 %v1386_v55, %s1791_s8  ;;  %v1574_v55 = vld [vmem:[#allocation2 + $0x40] sm:$0xff] }
 0xeeb   :  { %v1388_v15 = vpop.permute.xlu2 %1387 }
 0xeec   :  { %v1396_v59 = vsel %vm427_vm3, %v1384_v51, %v1388_v15 }
 0xf02   :  { %v1394_v63 = vpop.permute.xlu1 %1393  ;;  %v1391_v3 = vpop.permute.xlu0 %1390 }
 0xf03   :  { %v1397_v18 = vsel %vm435_vm7, %v1396_v59, %v1391_v3 }
 0xf04   :  { %v1398_v7 = vsel %vm443_vm11, %v1397_v18, %v1394_v63  ;;  %v1575_v63 = vld [vmem:[#allocation2 + $0x48] sm:$0xff] }
 0xf05   :  { %v1399_v21 = vperm.slane %v1398_v7, 0  ;;  %v1576_v7 = vld [vmem:[#allocation2 + $0x50] sm:$0xff] }
 0xf07   :  { %v1400_v19 = vmul.f32 %v1399_v21, %v2270_v45  ;;  %v1401_v23 = vmul.f32 %v1399_v21, %v2272_v49  ;;  %v1402_v24 = vmul.f32 %v1399_v21, %v2275_v50  ;;  %v1403_v26 = vmul.f32 %v1399_v21, %v2278_v52 }
 0xf08   :  { %v1404_v28 = vmul.f32 %v1399_v21, %v2281_v53  ;;  %v1405_v9 = vmul.f32 %v1399_v21, %v2284_v54  ;;  %v1406_v33 = vmul.f32 %v1399_v21, %v2287_v44  ;;  %v1407_v31 = vmul.f32 %v1399_v21, %v2290_v37  ;;  %v1566_v53 = vld [vmem:[#allocation2] sm:$0xff]  ;;  %v1567_v54 = vld [vmem:[#allocation2 + $0x8] sm:$0xff]  ;;  %v1568_v44 = vld [vmem:[#allocation2 + $0x10] sm:$0xff] }
 0xf09   :  { %v1426_v34 = vadd.f32 %v1418_v17, %v1400_v19  ;;  %v1427_v10 = vadd.f32 %v1419_v22, %v1401_v23  ;;  %v1428_v35 = vadd.f32 %v1420_v25, %v1402_v24  ;;  %v1429_v45 = vadd.f32 %v1421_v27, %v1403_v26  ;;  %v1569_v37 = vld [vmem:[#allocation2 + $0x18] sm:$0xff] }
 0xf0a   :  { %v1408_v49 = vmul.f32 %v1399_v21, %v2293_v57  ;;  %v1430_v29 = vadd.f32 %v1418_v17, %v1404_v28  ;;  %v1409_v50 = vmul.f32 %v1399_v21, %v2295_v11  ;;  %v1410_v52 = vmul.f32 %v1399_v21, %v2298_v36 }
 0xf0b   :  { %v1431_v43 = vadd.f32 %v1419_v22, %v1405_v9  ;;  %v1432_v39 = vadd.f32 %v1420_v25, %v1406_v33  ;;  %v1442_v41 = vadd.f32 %v1566_v53, %v1426_v34  ;;  %v1443_v30 = vadd.f32 %v1567_v54, %v1427_v10  ;;  %v1579_v33 = vld [vmem:[#allocation2 + $0x68] sm:$0xff]  ;;  %v1580_v10 = vld [vmem:[#allocation2 + $0x70] sm:$0xff] }
 0xf0c   :  { %v1444_v42 = vadd.f32 %v1568_v44, %v1428_v35  ;;  %v1411_v56 = vmul.f32 %v1399_v21, %v2301_v38  ;;  %v1433_v46 = vadd.f32 %v1421_v27, %v1407_v31  ;;  %v1445_v48 = vadd.f32 %v1569_v37, %v1429_v45  ;;  %v1581_v31 = vld [vmem:[#allocation2 + $0x78] sm:$0xff] }
 0xf0d   :  { %v1412_v57 = vmul.f32 %v1399_v21, %v2304_v32  ;;  %v1413_v60 = vmul.f32 %v1399_v21, %v2306_v58  ;;  %v1434_v11 = vadd.f32 %v1418_v17, %v1408_v49  ;;  %v1446_v36 = vadd.f32 %v1570_v61, %v1430_v29  ;;  %v1573_v32 = vld [vmem:[#allocation2 + $0x38] sm:$0xff] }
 0xf0e   :  { %v1414_v62 = vmul.f32 %v1399_v21, %v2309_v12  ;;  %v1435_v0 = vadd.f32 %v1419_v22, %v1409_v50  ;;  %v1436_v1 = vadd.f32 %v1420_v25, %v1410_v52  ;;  %v1447_v4 = vadd.f32 %v1571_v2, %v1431_v43 }
 0xf0f   :  { %v1448_v6 = vadd.f32 %v1572_v5, %v1432_v39  ;;  %v1458_v8 = vmax.f32 %v1442_v41, 0.0  ;;  %v1459_v38 = vmax.f32 %v1443_v30, 0.0  ;;  %v1460_v13 = vmax.f32 %v1444_v42, 0.0 }
 0xf10   :  { %v1415_v14 = vmul.f32 %v1399_v21, %v2312_v40  ;;  %v1437_v47 = vadd.f32 %v1421_v27, %v1411_v56  ;;  %v1449_v16 = vadd.f32 %v1573_v32, %v1433_v46  ;;  %v1461_v58 = vmax.f32 %v1445_v48, 0.0  ;;  %v1577_v21 = vld [vmem:[#allocation2 + $0x58] sm:$0xff] }
 0xf11   :  { %v1438_v51 = vadd.f32 %v1418_v17, %v1412_v57  ;;  %v1450_v15 = vadd.f32 %v1574_v55, %v1434_v11  ;;  %v1462_v59 = vmax.f32 %v1446_v36, 0.0  ;;  %1474 = vst [vmem:[#allocation14] sm:$0xff] %v1458_v8  ;;  %v1439_v12 = vadd.f32 %v1419_v22, %v1413_v60  ;;  %v1578_v17 = vld [vmem:[#allocation2 + $0x60] sm:$0xff] }
 0xf12   :  { %v1451_v3 = vadd.f32 %v1575_v63, %v1435_v0  ;;  %v1463_v18 = vmax.f32 %v1447_v4, 0.0  ;;  %1475 = vst [vmem:[#allocation14 + $0x8] sm:$0xff] %v1459_v38  ;;  %v1440_v20 = vadd.f32 %v1420_v25, %v1414_v62  ;;  %v1452_v19 = vadd.f32 %v1576_v7, %v1436_v1 }
 0xf13   :  { %v1464_v23 = vmax.f32 %v1448_v6, 0.0  ;;  %1476 = vst [vmem:[#allocation14 + $0x10] sm:$0xff] %v1460_v13  ;;  %v1441_v40 = vadd.f32 %v1421_v27, %v1415_v14  ;;  %v1453_v24 = vadd.f32 %v1577_v21, %v1437_v47  ;;  %v1465_v26 = vmax.f32 %v1449_v16, 0.0 }
 0xf14   :  { %1477 = vst [vmem:[#allocation14 + $0x18] sm:$0xff] %v1461_v58  ;;  %v1454_v28 = vadd.f32 %v1578_v17, %v1438_v51  ;;  %v1466_v9 = vmax.f32 %v1450_v15, 0.0  ;;  %v1455_v22 = vadd.f32 %v1579_v33, %v1439_v12  ;;  %v1467_v34 = vmax.f32 %v1451_v3, 0.0 }
 0xf15   :  { %1478 = vst [vmem:[#allocation14 + $0x20] sm:$0xff] %v1462_v59  ;;  %v1456_v35 = vadd.f32 %v1580_v10, %v1440_v20  ;;  %v1468_v25 = vmax.f32 %v1452_v19, 0.0  ;;  %v1457_v45 = vadd.f32 %v1581_v31, %v1441_v40  ;;  %v1469_v49 = vmax.f32 %v1453_v24, 0.0 }
 0xf16   :  { %1479 = vst [vmem:[#allocation14 + $0x28] sm:$0xff] %v1463_v18  ;;  %v1470_v27 = vmax.f32 %v1454_v28, 0.0  ;;  %v1471_v29 = vmax.f32 %v1455_v22, 0.0 }
 0xf17   :  { %1480 = vst [vmem:[#allocation14 + $0x30] sm:$0xff] %v1464_v23  ;;  %v1472_v50 = vmax.f32 %v1456_v35, 0.0  ;;  %v1473_v52 = vmax.f32 %v1457_v45, 0.0 }
 0xf18   :  { %1481 = vst [vmem:[#allocation14 + $0x38] sm:$0xff] %v1465_v26 }
 0xf19   :  { %1482 = vst [vmem:[#allocation14 + $0x40] sm:$0xff] %v1466_v9 }
 0xf1a   :  { %1483 = vst [vmem:[#allocation14 + $0x48] sm:$0xff] %v1467_v34 }
 0xf1b   :  { %1484 = vst [vmem:[#allocation14 + $0x50] sm:$0xff] %v1468_v25 }
 0xf1c   :  { %1485 = vst [vmem:[#allocation14 + $0x58] sm:$0xff] %v1469_v49 }
 0xf1d   :  { %1486 = vst [vmem:[#allocation14 + $0x60] sm:$0xff] %v1470_v27 }
 0xf1e   :  { %1487 = vst [vmem:[#allocation14 + $0x68] sm:$0xff] %v1471_v29 }
 0xf1f   :  { %1488 = vst [vmem:[#allocation14 + $0x70] sm:$0xff] %v1472_v50 }
 0xf20   :  { %1489 = vst [vmem:[#allocation14 + $0x78] sm:$0xff] %v1473_v52 }
 0xf21   :  { %1502 = dma.vmem_to_hbm [thread:$0]  %s1495_s11, 2048, %s1497_s18, [#allocation4], %s1790_s23, %s1790_s23, %s1791_s8  }
 0xf22   :  { %1782 = dma.done.wait [#allocation4], 2048  }
 0xf23   :  { %1783 = vsyncadd [#allocation4], 4294965248 }
 0xf24   :  { %1507 = vsyncpa [#allocation3], 1 }
 0xf25   :  { %1508 = vsyncpa [#allocation6], 1 }
 0xf26   :  { %1509 = vsyncpa [#allocation9], 1 }
 0xf27   :  { %1510 = vsyncpa [#allocation12], 1 }
 0xf28   :  { %1511 = vsyncpa [#allocation4], 1 }

</bundles_post_ra>
